<compile_context>
chip_gen: v5e
topology: v5e:2x2
jax: 0.10.0
libtpu: 0.0.40
codegen_flags: <defaults>
</compile_context>

<pallas_src>
import math
from functools import partial

import jax
import jax.numpy as jnp
from jax.experimental import pallas as pl
from jax.experimental.pallas import tpu as pltpu


# --------------------------------------------------------------------------
# shared helpers
# --------------------------------------------------------------------------
def _layernorm(v, g, b, eps=1e-5):
    mu = jnp.mean(v, axis=-1, keepdims=True)
    var = jnp.mean((v - mu) ** 2, axis=-1, keepdims=True)
    return (v - mu) * jax.lax.rsqrt(var + jnp.float32(eps)) * g + b


def _vmem_capacity_bytes():
    try:
        return int(pltpu.get_tpu_info().vmem_capacity_bytes)
    except Exception:
        return 128 * 1024 * 1024  # v5e/v6e default


def _resident_spec(p, single_buffer):
    """Full-array block with constant index map: weight stays resident in VMEM."""
    nd = p.ndim
    idx = lambda *_, _nd=nd: (0,) * _nd
    if single_buffer:
        try:
            # Constant index_map => double-buffering is pure VMEM waste (v7x).
            return pl.BlockSpec(p.shape, idx, pipeline_mode=pl.Buffered(1))
        except TypeError:
            pass
    return pl.BlockSpec(p.shape, idx)


def prepare_block_params(params):
    """One-time host-side weight prep: fuse QKV weights, cast matmul weights bf16."""
    (ln1_g, ln1_b, wq, bq, wk, bk, wv, bv, wp, bp,
     ln2_g, ln2_b, w1, b1, w2, b2) = params
    bf, f32 = jnp.bfloat16, jnp.float32
    return {
        "ln1_g": ln1_g.astype(f32), "ln1_b": ln1_b.astype(f32),
        "wqkv": jnp.concatenate([wq, wk, wv], axis=1).astype(bf),   # (C, 3C)
        "bqkv": jnp.concatenate([bq, bk, bv], axis=1).astype(f32),  # (1, 3C)
        "wp": wp.astype(bf), "bp": bp.astype(f32),
        "ln2_g": ln2_g.astype(f32), "ln2_b": ln2_b.astype(f32),
        "w1": w1.astype(bf), "b1": b1.astype(f32),
        "w2": w2.astype(bf), "b2": b2.astype(f32),
    }


# --------------------------------------------------------------------------
# pass 1: LN1 + fused QKV projection -> head-major bf16 (B, nh, T, hd)
# --------------------------------------------------------------------------
def _qkv_proj_kernel(x_ref, ln1_g_ref, ln1_b_ref, wqkv_ref, bqkv_ref,
                     q_ref, k_ref, v_ref, *, n_head, scale):
    t1, C = x_ref.shape[1], x_ref.shape[2]
    hd = C // n_head

    x = x_ref[0].astype(jnp.float32)                                # (t1, C)
    h = _layernorm(x, ln1_g_ref[...], ln1_b_ref[...])
    qkv = jnp.dot(h.astype(jnp.bfloat16), wqkv_ref[...],
                  preferred_element_type=jnp.float32) + bqkv_ref[...]

    def to_heads(a):                                                # (t1, C) -> (nh, t1, hd)
        return a.reshape(t1, n_head, hd).transpose(1, 0, 2).astype(jnp.bfloat16)

    q_ref[0] = to_heads(qkv[:, :C] * jnp.float32(scale))            # pre-scaled Q
    k_ref[0] = to_heads(qkv[:, C:2 * C])
    v_ref[0] = to_heads(qkv[:, 2 * C:])


# --------------------------------------------------------------------------
# pass 2: flash attention (online softmax) + proj + residual + MLP + residual
# --------------------------------------------------------------------------
def _attn_mlp_kernel(x_ref, q_ref, k_ref, v_ref,
                     wp_ref, bp_ref, ln2_g_ref, ln2_b_ref,
                     w1_ref, b1_ref, w2_ref, b2_ref,
                     o_ref, m_scr, l_scr, acc_scr):
    qi = pl.program_id(1)
    ki = pl.program_id(2)
    nkv = pl.num_programs(2)

    n_head, tq, hd = q_ref.shape[1], q_ref.shape[2], q_ref.shape[3]
    tkv = k_ref.shape[2]
    C = x_ref.shape[2]

    q_start = qi * tq
    kv_start = ki * tkv
    neg = jnp.float32(-1e30)

    @pl.when(ki == 0)
    def _init():
        m_scr[...] = jnp.full(m_scr.shape, neg, jnp.float32)
        l_scr[...] = jnp.zeros(l_scr.shape, jnp.float32)
        acc_scr[...] = jnp.zeros(acc_scr.shape, jnp.float32)

    def _scores():
        # all heads in one batched contraction (no per-head Python loop)
        return jnp.einsum('hqd,hkd->hqk', q_ref[0], k_ref[0],
                          preferred_element_type=jnp.float32)       # (nh, tq, tkv)

    def _online_update(s):
        m_prev = m_scr[...]
        m_new = jnp.maximum(m_prev, jnp.max(s, axis=-1, keepdims=True))
        alpha = jnp.exp(m_prev - m_new)
        p = jnp.exp(s - m_new)                                      # attn_drop: identity
        l_scr[...] = alpha * l_scr[...] + jnp.sum(p, axis=-1, keepdims=True)
        acc_scr[...] = alpha * acc_scr[...] + jnp.einsum(
            'hqk,hkd->hqd', p.astype(jnp.bfloat16), v_ref[0],
            preferred_element_type=jnp.float32)
        m_scr[...] = m_new

    interior = kv_start + tkv - 1 <= q_start                        # fully unmasked tile
    straddle = jnp.logical_and(kv_start <= q_start + tq - 1,        # intersects the mask
                               kv_start + tkv - 1 > q_start)
    # (fully-masked tiles: neither branch runs; their DMA is also skipped via
    #  the clamped kv index_map in the wrapper)

    @pl.when(interior)
    def _attend_fast():                                             # no mask needed
        _online_update(_scores())

    @pl.when(straddle)
    def _attend_masked():                                           # diagonal tile
        s = _scores()
        q_pos = q_start + jax.lax.broadcasted_iota(jnp.int32, (1, tq, tkv), 1)
        k_pos = kv_start + jax.lax.broadcasted_iota(jnp.int32, (1, tq, tkv), 2)
        _online_update(jnp.where(q_pos >= k_pos, s, neg))

    @pl.when(ki == nkv - 1)
    def _finalize():
        x_q = x_ref[0].astype(jnp.float32)                          # (tq, C)
        # exact reciprocal: runs once per query tile, cost negligible
        inv_l = pl.reciprocal(l_scr[...], approx=False)             # (nh, tq, 1)
        y = (acc_scr[...] * inv_l).transpose(1, 0, 2).reshape(tq, C)
        y = jnp.dot(y.astype(jnp.bfloat16), wp_ref[...],
                    preferred_element_type=jnp.float32) + bp_ref[...]
        x1 = x_q + y                                                # resid_drop: identity

        h = _layernorm(x1, ln2_g_ref[...], ln2_b_ref[...])
        h = jnp.dot(h.astype(jnp.bfloat16), w1_ref[...],
                    preferred_element_type=jnp.float32) + b1_ref[...]
        # exact (erf) GELU, matching torch.nn.GELU() default
        h = 0.5 * h * (1.0 + jax.lax.erf(h * jnp.float32(1.0 / math.sqrt(2.0))))
        h = jnp.dot(h.astype(jnp.bfloat16), w2_ref[...],
                    preferred_element_type=jnp.float32) + b2_ref[...]
        o_ref[0] = (x1 + h).astype(o_ref.dtype)                     # mlp dropout: identity


# --------------------------------------------------------------------------
# wrapper
# --------------------------------------------------------------------------
def transformer_block(x, prepared, n_head, *, tq=None, tkv=None,
                      single_buffer_weights=True):
    """x: (B, T, C).  prepared: output of prepare_block_params (do once)."""
    B, T, C = x.shape
    assert C % n_head == 0
    hd = C // n_head
    p = prepared

    # generation-aware VMEM budget & tile sizes
    vmem_cap = _vmem_capacity_bytes()
    small_vmem = vmem_cap <= 64 * 1024 * 1024           # v7x: 64 MiB / TC
    vmem_limit = (48 if small_vmem else 64) * 1024 * 1024

    if tq is None:
        tq = min(T, 256)
    if tkv is None:
        tkv = min(T, 256 if small_vmem else 512)
    assert T % tq == 0 and T % tkv == 0

    x_bf = x.astype(jnp.bfloat16)                        # halves activation DMA bytes
    scale = 1.0 / math.sqrt(hd)

    # ---- pass 1: LN1 + fused QKV projection, head-major bf16 outputs -------
    t1 = min(T, 256)
    assert T % t1 == 0
    qkv_weights = [p["ln1_g"], p["ln1_b"], p["wqkv"], p["bqkv"]]
    qh, kh, vh = pl.pallas_call(
        partial(_qkv_proj_kernel, n_head=n_head, scale=scale),
        out_shape=[jax.ShapeDtypeStruct((B, n_head, T, hd), jnp.bfloat16)] * 3,
        grid=(B, T // t1),
        in_specs=[pl.BlockSpec((1, t1, C), lambda b, i: (b, i, 0))]
                 + [_resident_spec(w, single_buffer_weights) for w in qkv_weights],
        out_specs=[pl.BlockSpec((1, n_head, t1, hd), lambda b, i: (b, 0, i, 0))] * 3,
        compiler_params=pltpu.CompilerParams(
            dimension_semantics=("parallel", "parallel"),
            vmem_limit_bytes=vmem_limit),
    )(x_bf, *qkv_weights)

    # ---- pass 2: attention + MLP, fused --------------------------------------
    def kv_idx(b, qi, ki):
        # clamp to the last kv block that intersects this query tile's causal
        # mask: fully-masked tiles repeat the block index => Pallas skips DMA
        return (b, 0, jnp.minimum(ki, (qi * tq + tq - 1) // tkv), 0)

    attn_weights = [p["wp"], p["bp"], p["ln2_g"], p["ln2_b"],
                    p["w1"], p["b1"], p["w2"], p["b2"]]
    in_specs = [
        pl.BlockSpec((1, tq, C), lambda b, qi, ki: (b, qi, 0)),            # x (residual)
        pl.BlockSpec((1, n_head, tq, hd), lambda b, qi, ki: (b, 0, qi, 0)),  # Q
        pl.BlockSpec((1, n_head, tkv, hd), kv_idx),                        # K
        pl.BlockSpec((1, n_head, tkv, hd), kv_idx),                        # V
    ] + [_resident_spec(w, single_buffer_weights) for w in attn_weights]

    return pl.pallas_call(
        _attn_mlp_kernel,
        out_shape=jax.ShapeDtypeStruct((B, T, C), x.dtype),
        grid=(B, T // tq, T // tkv),
        in_specs=in_specs,
        out_specs=pl.BlockSpec((1, tq, C), lambda b, qi, ki: (b, qi, 0)),
        scratch_shapes=[
            pltpu.VMEM((n_head, tq, 1), jnp.float32),    # running row max
            pltpu.VMEM((n_head, tq, 1), jnp.float32),    # running softmax denom
            pltpu.VMEM((n_head, tq, hd), jnp.float32),   # attention accumulator
        ],
        compiler_params=pltpu.CompilerParams(
            dimension_semantics=("parallel", "parallel", "arbitrary"),
            vmem_limit_bytes=vmem_limit),
    )(x_bf, qh, kh, vh, *attn_weights)


# ---------------- pure-JAX reference (for correctness check) ----------------
def _ref_block(x, params, n_head):
    (ln1_g, ln1_b, wq, bq, wk, bk, wv, bv, wp, bp,
     ln2_g, ln2_b, w1, b1, w2, b2) = params
    B, T, C = x.shape
    hd = C // n_head
    eps = 1e-5

    def ln(v, g, b):
        mu = jnp.mean(v, axis=-1, keepdims=True)
        var = jnp.mean((v - mu) ** 2, axis=-1, keepdims=True)
        return (v - mu) / jnp.sqrt(var + eps) * g + b

    h = ln(x, ln1_g, ln1_b)
    q = (h @ wq + bq).reshape(B, T, n_head, hd).transpose(0, 2, 1, 3)
    k = (h @ wk + bk).reshape(B, T, n_head, hd).transpose(0, 2, 1, 3)
    v = (h @ wv + bv).reshape(B, T, n_head, hd).transpose(0, 2, 1, 3)
    att = jnp.einsum("bhtd,bhsd->bhts", q, k) / math.sqrt(hd)
    mask = jnp.tril(jnp.ones((T, T), dtype=bool))
    att = jnp.where(mask, att, -1e30)
    att = jax.nn.softmax(att, axis=-1)
    y = jnp.einsum("bhts,bhsd->bhtd", att, v).transpose(0, 2, 1, 3).reshape(B, T, C)
    x = x + (y @ wp + bp)
    h = ln(x, ln2_g, ln2_b)
    h = h @ w1 + b1
    h = 0.5 * h * (1.0 + jax.lax.erf(h / jnp.sqrt(2.0)))
    x = x + (h @ w2 + b2)
    return x


if __name__ == "__main__":
    B, T, C, n_head = 2, 8, 32, 4          # block_size == T

    key = jax.random.PRNGKey(0)
    ks = jax.random.split(key, 18)

    def w(k, shape, s=0.02):
        return (s * jax.random.normal(k, shape)).astype(jnp.float32)

    params = [
        1.0 + 0.1 * jax.random.normal(ks[0], (1, C)).astype(jnp.float32),   # ln1 gamma
        0.1 * jax.random.normal(ks[1], (1, C)).astype(jnp.float32),         # ln1 beta
        w(ks[2], (C, C)), w(ks[3], (1, C)),                                  # query W, b
        w(ks[4], (C, C)), w(ks[5], (1, C)),                                  # key   W, b
        w(ks[6], (C, C)), w(ks[7], (1, C)),                                  # value W, b
        w(ks[8], (C, C)), w(ks[9], (1, C)),                                  # proj  W, b
        1.0 + 0.1 * jax.random.normal(ks[10], (1, C)).astype(jnp.float32),  # ln2 gamma
        0.1 * jax.random.normal(ks[11], (1, C)).astype(jnp.float32),        # ln2 beta
        w(ks[12], (C, 4 * C)), w(ks[13], (1, 4 * C)),                        # mlp fc1
        w(ks[14], (4 * C, C)), w(ks[15], (1, C)),                            # mlp fc2
    ]

    x = jax.random.normal(ks[16], (B, T, C)).astype(jnp.float32)

    # one-time weight preprocessing (hoisted out of the per-call path)
    prepared = prepare_block_params(params)

    # single-tile path (tq = tkv = T)
    single_buffer = True
    try:
        out = jax.block_until_ready(
            transformer_block(x, prepared, n_head, single_buffer_weights=True))
    except Exception:
        # graceful fallback if this jax version rejects pipeline_mode=pl.Buffered(1)
        single_buffer = False
        out = jax.block_until_ready(
            transformer_block(x, prepared, n_head, single_buffer_weights=False))

    ref = _ref_block(x, params, n_head)
    assert out.shape == (B, T, C)
    err = float(jnp.max(jnp.abs(out - ref)))
    assert jnp.allclose(out, ref, atol=3e-2, rtol=3e-2), f"max abs diff {err}"

    # multi-tile path: exercises online softmax across kv tiles, the masked
    # diagonal path, the unmasked interior fast path, and the causal DMA clamp
    T2 = 16
    x2 = jax.random.normal(ks[17], (B, T2, C)).astype(jnp.float32)
    out2 = jax.block_until_ready(
        transformer_block(x2, prepared, n_head, tq=8, tkv=8,
                          single_buffer_weights=single_buffer))
    ref2 = _ref_block(x2, params, n_head)
    err2 = float(jnp.max(jnp.abs(out2 - ref2)))
    assert jnp.allclose(out2, ref2, atol=3e-2, rtol=3e-2), f"max abs diff {err2}"

    print("KERNEL_OK")
</pallas_src>

<mosaic_0001>
module attributes {stable_mosaic.version = 11 : i64} {
  func.func @_qkv_proj_kernel(%arg0: i32, %arg1: i32, %arg2: memref<1x8x32xbf16, #tpu.memory_space<vmem>>, %arg3: memref<1x32xf32, #tpu.memory_space<vmem>>, %arg4: memref<1x32xf32, #tpu.memory_space<vmem>>, %arg5: memref<32x96xbf16, #tpu.memory_space<vmem>>, %arg6: memref<1x96xf32, #tpu.memory_space<vmem>>, %arg7: memref<1x4x8x8xbf16, #tpu.memory_space<vmem>>, %arg8: memref<1x4x8x8xbf16, #tpu.memory_space<vmem>>, %arg9: memref<1x4x8x8xbf16, #tpu.memory_space<vmem>>) attributes {dimension_semantics = [#tpu.dimension_semantics<parallel>, #tpu.dimension_semantics<parallel>], iteration_bounds = array<i64: 2, 1>, scalar_prefetch = 0 : i64, scratch_operands = 0 : i64, tpu.core_type = #tpu.core_type<tc>, window_params = [{transform_indices = @transform_0, window_bounds = array<i64: 1, 8, 32>}, {pipeline_mode = #tpu.pipeline_mode<synchronous>, transform_indices = @transform_1, window_bounds = array<i64: 1, 32>}, {pipeline_mode = #tpu.pipeline_mode<synchronous>, transform_indices = @transform_2, window_bounds = array<i64: 1, 32>}, {pipeline_mode = #tpu.pipeline_mode<synchronous>, transform_indices = @transform_3, window_bounds = array<i64: 32, 96>}, {pipeline_mode = #tpu.pipeline_mode<synchronous>, transform_indices = @transform_4, window_bounds = array<i64: 1, 96>}, {transform_indices = @transform_5, window_bounds = array<i64: 1, 4, 8, 8>}, {transform_indices = @transform_6, window_bounds = array<i64: 1, 4, 8, 8>}, {transform_indices = @transform_7, window_bounds = array<i64: 1, 4, 8, 8>}]} {
    %c0 = arith.constant 0 : index
    %c0_0 = arith.constant 0 : index
    %c0_1 = arith.constant 0 : index
    %0 = vector.load %arg2[%c0, %c0_0, %c0_1] : memref<1x8x32xbf16, #tpu.memory_space<vmem>>, vector<1x8x32xbf16>
    %1 = vector.shape_cast %0 : vector<1x8x32xbf16> to vector<8x32xbf16>
    %2 = arith.extf %1 : vector<8x32xbf16> to vector<8x32xf32>
    %c0_2 = arith.constant 0 : index
    %c0_3 = arith.constant 0 : index
    %3 = vector.load %arg3[%c0_2, %c0_3] : memref<1x32xf32, #tpu.memory_space<vmem>>, vector<1x32xf32>
    %c0_4 = arith.constant 0 : index
    %c0_5 = arith.constant 0 : index
    %4 = vector.load %arg4[%c0_4, %c0_5] : memref<1x32xf32, #tpu.memory_space<vmem>>, vector<1x32xf32>
    %cst = arith.constant dense<0.000000e+00> : vector<8xf32>
    %5 = vector.multi_reduction <add>, %2, %cst [1] : vector<8x32xf32> to vector<8xf32>
    %6 = vector.shape_cast %5 : vector<8xf32> to vector<8x1xf32>
    %cst_6 = arith.constant 3.200000e+01 : f32
    %7 = vector.broadcast %cst_6 : f32 to vector<8x1xf32>
    %8 = arith.divf %6, %7 : vector<8x1xf32>
    %9 = vector.broadcast %8 : vector<8x1xf32> to vector<8x32xf32>
    %10 = arith.subf %2, %9 : vector<8x32xf32>
    %11 = arith.mulf %10, %10 : vector<8x32xf32>
    %cst_7 = arith.constant dense<0.000000e+00> : vector<8xf32>
    %12 = vector.multi_reduction <add>, %11, %cst_7 [1] : vector<8x32xf32> to vector<8xf32>
    %13 = vector.shape_cast %12 : vector<8xf32> to vector<8x1xf32>
    %cst_8 = arith.constant 3.200000e+01 : f32
    %14 = vector.broadcast %cst_8 : f32 to vector<8x1xf32>
    %15 = arith.divf %13, %14 : vector<8x1xf32>
    %16 = vector.broadcast %8 : vector<8x1xf32> to vector<8x32xf32>
    %17 = arith.subf %2, %16 : vector<8x32xf32>
    %cst_9 = arith.constant 9.99999974E-6 : f32
    %18 = vector.broadcast %cst_9 : f32 to vector<8x1xf32>
    %19 = arith.addf %15, %18 : vector<8x1xf32>
    %20 = math.rsqrt %19 : vector<8x1xf32>
    %21 = vector.broadcast %20 : vector<8x1xf32> to vector<8x32xf32>
    %22 = arith.mulf %17, %21 : vector<8x32xf32>
    %23 = vector.broadcast %3 : vector<1x32xf32> to vector<8x32xf32>
    %24 = arith.mulf %22, %23 : vector<8x32xf32>
    %25 = vector.broadcast %4 : vector<1x32xf32> to vector<8x32xf32>
    %26 = arith.addf %24, %25 : vector<8x32xf32>
    %27 = arith.truncf %26 : vector<8x32xf32> to vector<8x32xbf16>
    %c0_10 = arith.constant 0 : index
    %c0_11 = arith.constant 0 : index
    %28 = vector.load %arg5[%c0_10, %c0_11] : memref<32x96xbf16, #tpu.memory_space<vmem>>, vector<32x96xbf16>
    %cst_12 = arith.constant dense<0.000000e+00> : vector<8x96xf32>
    %29 = tpu.matmul %27, %28, %cst_12 {dimension_numbers = #tpu.dot_dimension_numbers<[1], [0], [0], [1], [0, 0, 1, 1], [], []>} : vector<8x32xbf16>, vector<32x96xbf16>, vector<8x96xf32> -> vector<8x96xf32>
    %c0_13 = arith.constant 0 : index
    %c0_14 = arith.constant 0 : index
    %30 = vector.load %arg6[%c0_13, %c0_14] : memref<1x96xf32, #tpu.memory_space<vmem>>, vector<1x96xf32>
    %31 = vector.broadcast %30 : vector<1x96xf32> to vector<8x96xf32>
    %32 = arith.addf %29, %31 : vector<8x96xf32>
    %33 = vector.extract_strided_slice %32 {offsets = [0, 0], sizes = [8, 32], strides = [1, 1]} : vector<8x96xf32> to vector<8x32xf32>
    %cst_15 = arith.constant 0.353553385 : f32
    %34 = vector.broadcast %cst_15 : f32 to vector<8x32xf32>
    %35 = arith.mulf %33, %34 : vector<8x32xf32>
    %36 = vector.shape_cast %35 : vector<8x32xf32> to vector<8x4x8xf32>
    %37 = tpu.transpose %36, [1, 0, 2] : vector<8x4x8xf32> -> vector<4x8x8xf32>
    %38 = arith.truncf %37 : vector<4x8x8xf32> to vector<4x8x8xbf16>
    %c0_16 = arith.constant 0 : index
    %c0_17 = arith.constant 0 : index
    %c0_18 = arith.constant 0 : index
    %c0_19 = arith.constant 0 : index
    %39 = vector.load %arg7[%c0_16, %c0_17, %c0_18, %c0_19] : memref<1x4x8x8xbf16, #tpu.memory_space<vmem>>, vector<1x4x8x8xbf16>
    %40 = vector.shape_cast %39 : vector<1x4x8x8xbf16> to vector<4x8x8xbf16>
    %41 = vector.shape_cast %38 : vector<4x8x8xbf16> to vector<1x4x8x8xbf16>
    tpu.vector_store %arg7[%c0_16, %c0_17, %c0_18, %c0_19], %41 {strides = array<i32>} : memref<1x4x8x8xbf16, #tpu.memory_space<vmem>>, vector<1x4x8x8xbf16>,
    %42 = vector.extract_strided_slice %32 {offsets = [0, 32], sizes = [8, 32], strides = [1, 1]} : vector<8x96xf32> to vector<8x32xf32>
    %43 = vector.shape_cast %42 : vector<8x32xf32> to vector<8x4x8xf32>
    %44 = tpu.transpose %43, [1, 0, 2] : vector<8x4x8xf32> -> vector<4x8x8xf32>
    %45 = arith.truncf %44 : vector<4x8x8xf32> to vector<4x8x8xbf16>
    %c0_20 = arith.constant 0 : index
    %c0_21 = arith.constant 0 : index
    %c0_22 = arith.constant 0 : index
    %c0_23 = arith.constant 0 : index
    %46 = vector.load %arg8[%c0_20, %c0_21, %c0_22, %c0_23] : memref<1x4x8x8xbf16, #tpu.memory_space<vmem>>, vector<1x4x8x8xbf16>
    %47 = vector.shape_cast %46 : vector<1x4x8x8xbf16> to vector<4x8x8xbf16>
    %48 = vector.shape_cast %45 : vector<4x8x8xbf16> to vector<1x4x8x8xbf16>
    tpu.vector_store %arg8[%c0_20, %c0_21, %c0_22, %c0_23], %48 {strides = array<i32>} : memref<1x4x8x8xbf16, #tpu.memory_space<vmem>>, vector<1x4x8x8xbf16>,
    %49 = vector.extract_strided_slice %32 {offsets = [0, 64], sizes = [8, 32], strides = [1, 1]} : vector<8x96xf32> to vector<8x32xf32>
    %50 = vector.shape_cast %49 : vector<8x32xf32> to vector<8x4x8xf32>
    %51 = tpu.transpose %50, [1, 0, 2] : vector<8x4x8xf32> -> vector<4x8x8xf32>
    %52 = arith.truncf %51 : vector<4x8x8xf32> to vector<4x8x8xbf16>
    %c0_24 = arith.constant 0 : index
    %c0_25 = arith.constant 0 : index
    %c0_26 = arith.constant 0 : index
    %c0_27 = arith.constant 0 : index
    %53 = vector.load %arg9[%c0_24, %c0_25, %c0_26, %c0_27] : memref<1x4x8x8xbf16, #tpu.memory_space<vmem>>, vector<1x4x8x8xbf16>
    %54 = vector.shape_cast %53 : vector<1x4x8x8xbf16> to vector<4x8x8xbf16>
    %55 = vector.shape_cast %52 : vector<4x8x8xbf16> to vector<1x4x8x8xbf16>
    tpu.vector_store %arg9[%c0_24, %c0_25, %c0_26, %c0_27], %55 {strides = array<i32>} : memref<1x4x8x8xbf16, #tpu.memory_space<vmem>>, vector<1x4x8x8xbf16>,
    return
  }
  func.func @transform_0(%arg0: i32, %arg1: i32) -> (i32, i32, i32) {
    %c0_i32 = arith.constant 0 : i32
    %c0_i32_0 = arith.constant 0 : i32
    return %arg0, %arg1, %c0_i32 : i32, i32, i32
  }
  func.func @transform_1(%arg0: i32, %arg1: i32) -> (i32, i32) {
    %c0_i32 = arith.constant 0 : i32
    %c0_i32_0 = arith.constant 0 : i32
    %c0_i32_1 = arith.constant 0 : i32
    return %c0_i32, %c0_i32_0 : i32, i32
  }
  func.func @transform_2(%arg0: i32, %arg1: i32) -> (i32, i32) {
    %c0_i32 = arith.constant 0 : i32
    %c0_i32_0 = arith.constant 0 : i32
    %c0_i32_1 = arith.constant 0 : i32
    return %c0_i32, %c0_i32_0 : i32, i32
  }
  func.func @transform_3(%arg0: i32, %arg1: i32) -> (i32, i32) {
    %c0_i32 = arith.constant 0 : i32
    %c0_i32_0 = arith.constant 0 : i32
    %c0_i32_1 = arith.constant 0 : i32
    return %c0_i32, %c0_i32_0 : i32, i32
  }
  func.func @transform_4(%arg0: i32, %arg1: i32) -> (i32, i32) {
    %c0_i32 = arith.constant 0 : i32
    %c0_i32_0 = arith.constant 0 : i32
    %c0_i32_1 = arith.constant 0 : i32
    return %c0_i32, %c0_i32_0 : i32, i32
  }
  func.func @transform_5(%arg0: i32, %arg1: i32) -> (i32, i32, i32, i32) {
    %c0_i32 = arith.constant 0 : i32
    %c0_i32_0 = arith.constant 0 : i32
    %c0_i32_1 = arith.constant 0 : i32
    return %arg0, %c0_i32, %arg1, %c0_i32_0 : i32, i32, i32, i32
  }
  func.func @transform_6(%arg0: i32, %arg1: i32) -> (i32, i32, i32, i32) {
    %c0_i32 = arith.constant 0 : i32
    %c0_i32_0 = arith.constant 0 : i32
    %c0_i32_1 = arith.constant 0 : i32
    return %arg0, %c0_i32, %arg1, %c0_i32_0 : i32, i32, i32, i32
  }
  func.func @transform_7(%arg0: i32, %arg1: i32) -> (i32, i32, i32, i32) {
    %c0_i32 = arith.constant 0 : i32
    %c0_i32_0 = arith.constant 0 : i32
    %c0_i32_1 = arith.constant 0 : i32
    return %arg0, %c0_i32, %arg1, %c0_i32_0 : i32, i32, i32, i32
  }
}

module attributes {stable_mosaic.version = 11 : i64} {
  func.func @_qkv_proj_kernel(%arg0: i32, %arg1: i32, %arg2: memref<1x8x32xbf16, #tpu.memory_space<vmem>>, %arg3: memref<1x32xf32, #tpu.memory_space<vmem>>, %arg4: memref<1x32xf32, #tpu.memory_space<vmem>>, %arg5: memref<32x96xbf16, #tpu.memory_space<vmem>>, %arg6: memref<1x96xf32, #tpu.memory_space<vmem>>, %arg7: memref<1x4x8x8xbf16, #tpu.memory_space<vmem>>, %arg8: memref<1x4x8x8xbf16, #tpu.memory_space<vmem>>, %arg9: memref<1x4x8x8xbf16, #tpu.memory_space<vmem>>) attributes {dimension_semantics = [#tpu.dimension_semantics<parallel>, #tpu.dimension_semantics<parallel>], iteration_bounds = array<i64: 2, 1>, scalar_prefetch = 0 : i64, scratch_operands = 0 : i64, tpu.core_type = #tpu.core_type<tc>, window_params = [{transform_indices = @transform_0, window_bounds = array<i64: 1, 8, 32>}, {pipeline_mode = #tpu.pipeline_mode<synchronous>, transform_indices = @transform_1, window_bounds = array<i64: 1, 32>}, {pipeline_mode = #tpu.pipeline_mode<synchronous>, transform_indices = @transform_2, window_bounds = array<i64: 1, 32>}, {pipeline_mode = #tpu.pipeline_mode<synchronous>, transform_indices = @transform_3, window_bounds = array<i64: 32, 96>}, {pipeline_mode = #tpu.pipeline_mode<synchronous>, transform_indices = @transform_4, window_bounds = array<i64: 1, 96>}, {transform_indices = @transform_5, window_bounds = array<i64: 1, 4, 8, 8>}, {transform_indices = @transform_6, window_bounds = array<i64: 1, 4, 8, 8>}, {transform_indices = @transform_7, window_bounds = array<i64: 1, 4, 8, 8>}]} {
    %c0 = arith.constant 0 : index
    %c0_0 = arith.constant 0 : index
    %c0_1 = arith.constant 0 : index
    %0 = vector.load %arg2[%c0, %c0_0, %c0_1] : memref<1x8x32xbf16, #tpu.memory_space<vmem>>, vector<1x8x32xbf16>
    %1 = vector.shape_cast %0 : vector<1x8x32xbf16> to vector<8x32xbf16>
    %2 = arith.extf %1 : vector<8x32xbf16> to vector<8x32xf32>
    %c0_2 = arith.constant 0 : index
    %c0_3 = arith.constant 0 : index
    %3 = vector.load %arg3[%c0_2, %c0_3] : memref<1x32xf32, #tpu.memory_space<vmem>>, vector<1x32xf32>
    %c0_4 = arith.constant 0 : index
    %c0_5 = arith.constant 0 : index
    %4 = vector.load %arg4[%c0_4, %c0_5] : memref<1x32xf32, #tpu.memory_space<vmem>>, vector<1x32xf32>
    %cst = arith.constant dense<0.000000e+00> : vector<8xf32>
    %5 = vector.multi_reduction <add>, %2, %cst [1] : vector<8x32xf32> to vector<8xf32>
    %6 = vector.shape_cast %5 : vector<8xf32> to vector<8x1xf32>
    %cst_6 = arith.constant 3.200000e+01 : f32
    %7 = vector.broadcast %cst_6 : f32 to vector<8x1xf32>
    %8 = arith.divf %6, %7 : vector<8x1xf32>
    %9 = vector.broadcast %8 : vector<8x1xf32> to vector<8x32xf32>
    %10 = arith.subf %2, %9 : vector<8x32xf32>
    %11 = arith.mulf %10, %10 : vector<8x32xf32>
    %cst_7 = arith.constant dense<0.000000e+00> : vector<8xf32>
    %12 = vector.multi_reduction <add>, %11, %cst_7 [1] : vector<8x32xf32> to vector<8xf32>
    %13 = vector.shape_cast %12 : vector<8xf32> to vector<8x1xf32>
    %cst_8 = arith.constant 3.200000e+01 : f32
    %14 = vector.broadcast %cst_8 : f32 to vector<8x1xf32>
    %15 = arith.divf %13, %14 : vector<8x1xf32>
    %16 = vector.broadcast %8 : vector<8x1xf32> to vector<8x32xf32>
    %17 = arith.subf %2, %16 : vector<8x32xf32>
    %cst_9 = arith.constant 9.99999974E-6 : f32
    %18 = vector.broadcast %cst_9 : f32 to vector<8x1xf32>
    %19 = arith.addf %15, %18 : vector<8x1xf32>
    %20 = math.rsqrt %19 : vector<8x1xf32>
    %21 = vector.broadcast %20 : vector<8x1xf32> to vector<8x32xf32>
    %22 = arith.mulf %17, %21 : vector<8x32xf32>
    %23 = vector.broadcast %3 : vector<1x32xf32> to vector<8x32xf32>
    %24 = arith.mulf %22, %23 : vector<8x32xf32>
    %25 = vector.broadcast %4 : vector<1x32xf32> to vector<8x32xf32>
    %26 = arith.addf %24, %25 : vector<8x32xf32>
    %27 = arith.truncf %26 : vector<8x32xf32> to vector<8x32xbf16>
    %c0_10 = arith.constant 0 : index
    %c0_11 = arith.constant 0 : index
    %28 = vector.load %arg5[%c0_10, %c0_11] : memref<32x96xbf16, #tpu.memory_space<vmem>>, vector<32x96xbf16>
    %cst_12 = arith.constant dense<0.000000e+00> : vector<8x96xf32>
    %29 = tpu.matmul %27, %28, %cst_12 {dimension_numbers = #tpu.dot_dimension_numbers<[1], [0], [0], [1], [0, 0, 1, 1], [], []>} : vector<8x32xbf16>, vector<32x96xbf16>, vector<8x96xf32> -> vector<8x96xf32>
    %c0_13 = arith.constant 0 : index
    %c0_14 = arith.constant 0 : index
    %30 = vector.load %arg6[%c0_13, %c0_14] : memref<1x96xf32, #tpu.memory_space<vmem>>, vector<1x96xf32>
    %31 = vector.broadcast %30 : vector<1x96xf32> to vector<8x96xf32>
    %32 = arith.addf %29, %31 : vector<8x96xf32>
    %33 = vector.extract_strided_slice %32 {offsets = [0, 0], sizes = [8, 32], strides = [1, 1]} : vector<8x96xf32> to vector<8x32xf32>
    %cst_15 = arith.constant 0.353553385 : f32
    %34 = vector.broadcast %cst_15 : f32 to vector<8x32xf32>
    %35 = arith.mulf %33, %34 : vector<8x32xf32>
    %36 = vector.shape_cast %35 : vector<8x32xf32> to vector<8x4x8xf32>
    %37 = tpu.transpose %36, [1, 0, 2] : vector<8x4x8xf32> -> vector<4x8x8xf32>
    %38 = arith.truncf %37 : vector<4x8x8xf32> to vector<4x8x8xbf16>
    %c0_16 = arith.constant 0 : index
    %c0_17 = arith.constant 0 : index
    %c0_18 = arith.constant 0 : index
    %c0_19 = arith.constant 0 : index
    %39 = vector.load %arg7[%c0_16, %c0_17, %c0_18, %c0_19] : memref<1x4x8x8xbf16, #tpu.memory_space<vmem>>, vector<1x4x8x8xbf16>
    %40 = vector.shape_cast %39 : vector<1x4x8x8xbf16> to vector<4x8x8xbf16>
    %41 = vector.shape_cast %38 : vector<4x8x8xbf16> to vector<1x4x8x8xbf16>
    tpu.vector_store %arg7[%c0_16, %c0_17, %c0_18, %c0_19], %41 {strides = array<i32>} : memref<1x4x8x8xbf16, #tpu.memory_space<vmem>>, vector<1x4x8x8xbf16>,
    %42 = vector.extract_strided_slice %32 {offsets = [0, 32], sizes = [8, 32], strides = [1, 1]} : vector<8x96xf32> to vector<8x32xf32>
    %43 = vector.shape_cast %42 : vector<8x32xf32> to vector<8x4x8xf32>
    %44 = tpu.transpose %43, [1, 0, 2] : vector<8x4x8xf32> -> vector<4x8x8xf32>
    %45 = arith.truncf %44 : vector<4x8x8xf32> to vector<4x8x8xbf16>
    %c0_20 = arith.constant 0 : index
    %c0_21 = arith.constant 0 : index
    %c0_22 = arith.constant 0 : index
    %c0_23 = arith.constant 0 : index
    %46 = vector.load %arg8[%c0_20, %c0_21, %c0_22, %c0_23] : memref<1x4x8x8xbf16, #tpu.memory_space<vmem>>, vector<1x4x8x8xbf16>
    %47 = vector.shape_cast %46 : vector<1x4x8x8xbf16> to vector<4x8x8xbf16>
    %48 = vector.shape_cast %45 : vector<4x8x8xbf16> to vector<1x4x8x8xbf16>
    tpu.vector_store %arg8[%c0_20, %c0_21, %c0_22, %c0_23], %48 {strides = array<i32>} : memref<1x4x8x8xbf16, #tpu.memory_space<vmem>>, vector<1x4x8x8xbf16>,
    %49 = vector.extract_strided_slice %32 {offsets = [0, 64], sizes = [8, 32], strides = [1, 1]} : vector<8x96xf32> to vector<8x32xf32>
    %50 = vector.shape_cast %49 : vector<8x32xf32> to vector<8x4x8xf32>
    %51 = tpu.transpose %50, [1, 0, 2] : vector<8x4x8xf32> -> vector<4x8x8xf32>
    %52 = arith.truncf %51 : vector<4x8x8xf32> to vector<4x8x8xbf16>
    %c0_24 = arith.constant 0 : index
    %c0_25 = arith.constant 0 : index
    %c0_26 = arith.constant 0 : index
    %c0_27 = arith.constant 0 : index
    %53 = vector.load %arg9[%c0_24, %c0_25, %c0_26, %c0_27] : memref<1x4x8x8xbf16, #tpu.memory_space<vmem>>, vector<1x4x8x8xbf16>
    %54 = vector.shape_cast %53 : vector<1x4x8x8xbf16> to vector<4x8x8xbf16>
    %55 = vector.shape_cast %52 : vector<4x8x8xbf16> to vector<1x4x8x8xbf16>
    tpu.vector_store %arg9[%c0_24, %c0_25, %c0_26, %c0_27], %55 {strides = array<i32>} : memref<1x4x8x8xbf16, #tpu.memory_space<vmem>>, vector<1x4x8x8xbf16>,
    return
  }
  func.func @transform_0(%arg0: i32, %arg1: i32) -> (i32, i32, i32) {
    %c0_i32 = arith.constant 0 : i32
    %c0_i32_0 = arith.constant 0 : i32
    return %arg0, %arg1, %c0_i32 : i32, i32, i32
  }
  func.func @transform_1(%arg0: i32, %arg1: i32) -> (i32, i32) {
    %c0_i32 = arith.constant 0 : i32
    %c0_i32_0 = arith.constant 0 : i32
    %c0_i32_1 = arith.constant 0 : i32
    return %c0_i32, %c0_i32_0 : i32, i32
  }
  func.func @transform_2(%arg0: i32, %arg1: i32) -> (i32, i32) {
    %c0_i32 = arith.constant 0 : i32
    %c0_i32_0 = arith.constant 0 : i32
    %c0_i32_1 = arith.constant 0 : i32
    return %c0_i32, %c0_i32_0 : i32, i32
  }
  func.func @transform_3(%arg0: i32, %arg1: i32) -> (i32, i32) {
    %c0_i32 = arith.constant 0 : i32
    %c0_i32_0 = arith.constant 0 : i32
    %c0_i32_1 = arith.constant 0 : i32
    return %c0_i32, %c0_i32_0 : i32, i32
  }
  func.func @transform_4(%arg0: i32, %arg1: i32) -> (i32, i32) {
    %c0_i32 = arith.constant 0 : i32
    %c0_i32_0 = arith.constant 0 : i32
    %c0_i32_1 = arith.constant 0 : i32
    return %c0_i32, %c0_i32_0 : i32, i32
  }
  func.func @transform_5(%arg0: i32, %arg1: i32) -> (i32, i32, i32, i32) {
    %c0_i32 = arith.constant 0 : i32
    %c0_i32_0 = arith.constant 0 : i32
    %c0_i32_1 = arith.constant 0 : i32
    return %arg0, %c0_i32, %arg1, %c0_i32_0 : i32, i32, i32, i32
  }
  func.func @transform_6(%arg0: i32, %arg1: i32) -> (i32, i32, i32, i32) {
    %c0_i32 = arith.constant 0 : i32
    %c0_i32_0 = arith.constant 0 : i32
    %c0_i32_1 = arith.constant 0 : i32
    return %arg0, %c0_i32, %arg1, %c0_i32_0 : i32, i32, i32, i32
  }
  func.func @transform_7(%arg0: i32, %arg1: i32) -> (i32, i32, i32, i32) {
    %c0_i32 = arith.constant 0 : i32
    %c0_i32_0 = arith.constant 0 : i32
    %c0_i32_1 = arith.constant 0 : i32
    return %arg0, %c0_i32, %arg1, %c0_i32_0 : i32, i32, i32, i32
  }
}

</mosaic_0001>

<bundles_post_ra>
// kernel: tpu_custom_call.1
= control target key start
LH: loop header
LB: loop body
LE: loop exit
PB: predicated region body
PF: predicated region fallthrough
CT: control target
= control target key end

     0   :  { %s1909_s0 = inlined_call_operand.hbm [shape: bf16[2,8,32], index: 0, kind: input, shape index: {}]   ;;  %s1910_s1 = inlined_call_operand.hbm [shape: f32[1,32], index: 1, kind: input, shape index: {}]   ;;  %s1911_s2 = inlined_call_operand.vmem [shape: f32[1,32], index: 2, kind: input, shape index: {}]   ;;  %s1912_s3 = inlined_call_operand.hbm [shape: bf16[32,96], index: 3, kind: input, shape index: {}]   ;;  %s1913_s4 = inlined_call_operand.vmem [shape: f32[1,96], index: 4, kind: input, shape index: {}]   ;;  %s1914_s5 = inlined_call_operand.hbm [shape: bf16[2,4,8,8], index: 5, kind: output, shape index: {0}]   ;;  %s1915_s6 = inlined_call_operand.hbm [shape: bf16[2,4,8,8], index: 6, kind: output, shape index: {1}]   ;;  %s1916_s7 = inlined_call_operand.hbm [shape: bf16[2,4,8,8], index: 7, kind: output, shape index: {2}]  }
   0x1   :  { %1920 = sst [smem:[#allocation16_spill]] %s1910_s1 }
   0x2   :  { %1921 = sst [smem:[#allocation17_spill]] %s1912_s3 }
   0x3   :  { %13 = vsyncpa [#allocation3], 0 }
   0x4   :  { %15 = vsyncpa [#allocation3 + $0x1], 0 }
   0x5   :  { %16 = vsyncpa [#allocation6], 0 }
   0x6   :  { %17 = vsyncpa [#allocation4], 0 }
   0x7   :  { %19 = vsyncpa [#allocation4 + $0x1], 0 }
   0x8   :  { %20 = vsyncpa [#allocation10], 0 }
   0x9   :  { %22 = vsyncpa [#allocation10 + $0x1], 0  ;;  %s1539_s24 = smov 0   ;;  %s1541_s25 = smov 0  }
   0xa   :  { %s1543_s26 = smov 0   ;;  %s1545_s27 = smov 0  }
   0xb   :  { %s1547_s28 = smov 0   ;;  %s1549_s29 = smov 0  }
   0xc LB: > { %s1570_s30 = sadd.s32 4294967295, %s1484_s29   ;;  %s1917_s8 = sadd.s32 4294967294, %s1484_s29   ;;  %s1484_s29 = sphi %s1549_s29, %s28_s29   ;;  %s1480_s28 = sphi %s1547_s28, %s1934_s28   ;;  %s1476_s27 = sphi %s1545_s27, %s1933_s27   ;;  %s1472_s26 = sphi %s1543_s26, %s1932_s26   ;;  %s1468_s25 = sphi %s1541_s25, %s1931_s25   ;;  %s1464_s24 = sphi %s1539_s24, %s1930_s24  }
   0xd   : > { %p62_p0 = scmp.ne.s32.totalorder %s1468_s25, %s1464_s24  ;;  %p63_p1 = scmp.eq.s32.totalorder %s1570_s30, 0 }
   0xe   : > { %p178_p2 = scmp.eq.s32.totalorder %s1917_s8, 1  ;;  %p1079_p4 = scmp.ge.s32.totalorder %s1484_s29, 1 }
   0xf   : > { %p1580_p3 = por %p63_p1, %p62_p0  ;;  %p241_p6 = scmp.lt.s32.totalorder %s1484_s29, 3 }
  0x10   : > { %p1585_p5 = por %p178_p2, %p62_p0  ;;  %s1924_s1 = sld [smem:[#allocation16_spill]] }
  0x11   : > { %p1593_p7 = pnand %p1079_p4, %p241_p6  ;;  %p1082_p8 = scmp.ge.s32.totalorder %s1484_s29, 2 }
  0x12   : > { %s1486_s15 = smov [#allocation5]   ;;  %s1926_s3 = sld [smem:[#allocation17_spill]] }
  0x13   : > { %p1133_p9 = pneg %p1593_p7  ;;  %s255_s16 = sshll.u32 %s1486_s15, 4  ;;  %s256_s16 = int_to_ptr.vmem [resolvable:$true] %s255_s16 }
  0x14   : > { %s1487_s20 = smov [#allocation7]   ;;  %s1488_s22 = smov 64  }
  0x15   : > { %p1134_p10 = pnand %p1133_p9, %p63_p1  ;;  %s269_s21 = sshll.u32 %s1487_s20, 4  ;;  %s270_s21 = int_to_ptr.vmem [resolvable:$true] %s269_s21 }
  0x16   : > { %s253_s13 = sshll.u32 %s1924_s1, 4  ;;  %s1489_s23 = smov 4   ;;  %s254_s13 = int_to_ptr.hbm [resolvable:$true] %s253_s13 }
  0x17   : > { %1136 = dma.hbm_to_vmem [thread:$0]  (!%p1134_p10), %s254_s13, 16, %s256_s16, [#allocation6]  }
  0x18   : > { %s267_s19 = sshll.u32 %s1926_s3, 4  ;;  %p172_p11 = scmp.eq.s32.totalorder %s1570_s30, 1  ;;  %s268_s19 = int_to_ptr.hbm [resolvable:$true] %s267_s19 }
  0x19   : > { %1139 = dma.hbm_to_vmem [thread:$0]  (!%p1134_p10), %s268_s19, 256, %s270_s21, [#allocation6], %s1488_s22, %s1488_s22, %s1489_s23  }
  0x1a   : > { %s40_s11 = sadd.s32 1, %s1480_s28  ;;  %s49_s12 = sadd.s32 1, %s1472_s26 }
  0x1b   : > { %p42_p12 = scmp.ge.s32.totalorder %s40_s11, 2  ;;  %p56_p13 = scmp.ne.s32.totalorder %s1472_s26, %s1468_s25 }
  0x1c   : > { %p57_p0 = scmp.eq.s32.totalorder %s1484_s29, 0  ;;  %p1156_p4 = scmp.lt.s32.totalorder %s1484_s29, 2 }
  0x1d   : > { %s1936_s11 = smov (%p42_p12, %s40_s11), 0  ;;  %p1613_p2 = por %p172_p11, %p56_p13 }
  0x1e   : > { %s44_s13 = ssub.s32 %s1480_s28, %s1936_s11  ;;  %s286_s16 = sand.u32 1, %s1472_s26  }
  0x1f   : > { %p47_p6 = scmp.eq.s32.totalorder %s44_s13, 0  ;;  %p58_p9 = por %p57_p0, %p56_p13 }
  0x20   : > { %s1083_s17 = sshll.u32 %s286_s16, 2  ;;  %s1084_s18 = sshll.u32 %s1480_s28, 2 }
  0x21   : > { %s1623_s19 = scalar_select %p47_p6, %s1472_s26, %s49_s12  }
  0x22   : > { %s295_s22 = scalar_lea.hbm %s1909_s0, %s1084_s18  ;;  %s290_s8 = scalar_lea.vmem [#allocation2], %s1083_s17 }
  0x23   : > { %s297_s23 = sshll.u32 %s295_s22, 4  ;;  %s299_s1 = sshll.u32 %s290_s8, 4  ;;  %s298_s23 = int_to_ptr.hbm [resolvable:$true] %s297_s23  ;;  %s300_s1 = int_to_ptr.vmem [resolvable:$true] %s299_s1 }
  0x24   : > { %p1141_p10 = pnand %p1156_p4, %p58_p9  ;;  %s287_s3 = scalar_lea.sflag [#allocation3], %s286_s16 }
  0x25   : > { %308 = sbr.rel (%p1593_p7) target bundleno = 730 (0x2da), region = 40  ;;  %s1633_s12 = sand.u32 (!%p1593_p7), 1, %s1468_s25  }
  0x26   : > { %1143 = dma.hbm_to_vmem [thread:$0]  (!%p1141_p10), %s298_s23, 64, %s300_s1, %s287_s3  }
  0x27   : > { %s1086_s13 = sshll.u32 (!%p1593_p7), %s1633_s12, 2  ;;  %s311_s18 = scalar_lea.sflag (!%p1593_p7), [#allocation3], %s1633_s12 }
  0x28   : > { %s314_s20 = scalar_lea.vmem (!%p1593_p7), [#allocation2], %s1086_s13 }
  0x2a   : > { %1447 = dma.done.wait (%p1580_p3), %s311_s18, 64  }
  0x2b   : > { %1449 = vsyncadd (%p1580_p3), %s311_s18, 4294967232 }
  0x2c   : > { %1451 = dma.done.wait (%p63_p1), [#allocation6], 272  }
  0x2d   : > { %1453 = vsyncadd (%p63_p1), [#allocation6], 4294967024  ;;  %vm371_vm0 = vcmask 261120   ;;  %v367_v0 = vld [vmem:[%s314_s20] sm:$0xf]  ;;  %v1490_v3 = vmov 32.0  }
  0x2e   : > { %v368_v1 = vunpack.c.l.bf16 %v367_v0  ;;  %1244 = vrcp.f32 %v1490_v3  ;;  %v1113_v15 = vld [vmem:[#allocation7 + $0x8] sm:$0xff]  ;;  %v1112_v16 = vld [vmem:[#allocation7] sm:$0xff]  ;;  %v1241_v26 = vld [vmem:[#allocation5] ss:$0 sm:$0xff]  ;;  %s1491_s14 = smov 104   ;;  %s1492_s16 = smov 112  }
  0x2f   : > { %439 = vmatpush.bf16.msra.mxu0 %v1113_v15  ;;  %v1242_v29 = vld [vmem:[%s1911_s2] ss:$0 sm:$0xff]  ;;  %s1493_s17 = smov 120   ;;  %s1494_s21 = smov 96   ;;  %v1496_v48 = vmov 1983009808  }
  0x30   : > { %v372_v2 = vsel %vm371_vm0, %v368_v1, 0.0  ;;  %v1243_v33 = vld [vmem:[%s1913_s4] ss:$0 sm:$0xff]  ;;  %s1918_s22 = smov 64   ;;  %v463_v49 = vunpack.c.l.s4 %v1496_v48  ;;  %vm458_vm5 = vcmask 1047556   ;;  %vm572_vm6 = vcmask 60416  }
  0x31   : > { %373 = vadd.xlane.f32.xlu0 %v372_v2  ;;  %v1497_v57 = vmov 1934713408   ;;  %s1706_s23 = sshll.u32 %s1476_s27, 4  ;;  %s1716_s13 = sshll.u32 %s1633_s12, 4 }
  0x32   : > { %v1658_v53 = vunpack.c.0.s8 %v463_v49  ;;  %v487_v58 = vunpack.c.l.s4 %v1497_v57  ;;  %s885_s20 = scalar_lea.hbm %s1915_s6, %s1706_s23  ;;  %s849_s1 = sand.u32 1, %s1570_s30  }
  0x33   : > { %440 = vmatpush.bf16.msra.mxu0 %v1112_v16  ;;  %s358_s3 = scalar_lea.vmem [#allocation9], %s1716_s13  ;;  %s1731_s9 = sshll.u32 %s885_s20, 4  ;;  %s889_s9 = int_to_ptr.hbm [resolvable:$true] %s1731_s9 }
  0x34   : > { %v1245_v4 = vpop.eup %1244  ;;  %s886_s8 = sshll.u32 %s358_s3, 4  ;;  %s1358_s18 = scalar_lea.hbm %s1915_s6, 32  ;;  %s1745_s8 = int_to_ptr.vmem [resolvable:$true] %s886_s8 }
  0x35   : > { %v376_v5 = vmul.f32 32.0, %v1245_v4  ;;  %vm380_vm1 = vweird.f32 %v1245_v4 }
  0x37   : > { %v377_v6 = vsub.f32 1.0, %v376_v5  ;;  %v1665_v5 = vunpack.c.0.s8 %v487_v58 }
  0x39   : > { %v378_v7 = vmul.f32 %v1245_v4, %v377_v6 }
  0x3b   : > { %v379_v8 = vadd.f32 %v1245_v4, %v378_v7 }
  0x3d   : > { %v381_v9 = vsel %vm380_vm1, %v1245_v4, %v379_v8 }
  0xa4   : > { %v374_v10 = vpop.xlane.xlu0 %373 }
  0xa5   : > { %v382_v11 = vmul.f32 %v381_v9, %v374_v10 }
  0xa7   : > { %v383_v12 = vsub.f32 %v368_v1, %v382_v11 }
  0xa9   : > { %v384_v13 = vmul.f32 %v383_v12, %v383_v12 }
  0xab   : > { %v385_v14 = vsel %vm371_vm0, %v384_v13, 0.0 }
  0xac   : > { %386 = vadd.xlane.f32.xlu0 %v385_v14 }
 0x11f   : > { %v387_v17 = vpop.xlane.xlu0 %386 }
 0x120   : > { %v388_v18 = vmul.f32 %v387_v17, %v381_v9 }
 0x122   : > { %v389_v19 = vadd.f32 1e-05, %v388_v18 }
 0x124   : > { %1246 = vrsqrt.f32 %v389_v19  ;;  %vm396_vm3 = vweird.f32 %v389_v19 }
 0x12a   : > { %v1247_v20 = vpop.eup %1246 }
 0x12b   : > { %v391_v21 = vmul.f32 %v1247_v20, %v389_v19  ;;  %vm397_vm2 = vweird.f32 %v1247_v20 }
 0x12c   : > { %vm398_vm4 = vmor %vm396_vm3, %vm397_vm2 }
 0x12d   : > { %v392_v22 = vmul.f32 %v1247_v20, %v391_v21 }
 0x12f   : > { %v393_v23 = vmul.f32 0.5, %v392_v22 }
 0x131   : > { %v394_v24 = vsub.f32 1.5, %v393_v23 }
 0x133   : > { %v395_v25 = vmul.f32 %v1247_v20, %v394_v24 }
 0x135   : > { %v399_v27 = vsel %vm398_vm4, %v1247_v20, %v395_v25 }
 0x136   : > { %v400_v28 = vmul.f32 %v399_v27, %v383_v12 }
 0x138   : > { %v404_v30 = vmul.f32 %v1241_v26, %v400_v28 }
 0x13a   : > { %v408_v31 = vadd.f32 %v1242_v29, %v404_v30 }
 0x13c   : > { %v409_v32 = vpack.c.bf16 %v408_v31, %v408_v31 }
 0x13e   : > { %1100 = vmatmul.msk.bf16.vlgmr.msra.gmra.mxu0 %vm371_vm0, %v409_v32 }
 0x1bb   : > { %v442_v34 = vpop.f32.mrf.mxu0 }
 0x1bc   : > { %v443_v35 = vadd.f32 %v1243_v33, %v442_v34 }
 0x1be   : > { %582 = vrot.lane.b32.xlu2 %v443_v35, %s1491_s14  ;;  %580 = vrot.lane.b32.xlu1 %v443_v35, %s1492_s16  ;;  %v446_v36 = vmul.f32 0.35355338, %v443_v35 }
 0x1c0   : > { %451 = vrot.lane.b32.xlu0 %v446_v36, %s1492_s16  ;;  %v460_v55 = vrot.slane %v446_v36, 4  ;;  %s1352_s16 = sshra.s32 %s889_s9, 4  ;;  %s1353_s16 = int_to_ptr.hbm [resolvable:$true] %s1352_s16 }
 0x1c1   : > { %p1359_p11 = scmp.lt.s32.totalorder %s1353_s16, %s1915_s6 }
 0x1c3   : > { %v444_v37 = vpop.f32.mrf.mxu0 }
 0x1c6   : > { %578 = vrot.lane.b32.xlu1 %v443_v35, %s1493_s17 }
 0x1ce   : > { %448 = vrot.lane.b32.xlu1 %v446_v36, %s1493_s17  ;;  %s1354_s17 = scalar_lea.hbm %s1353_s16, 16 }
 0x1cf   : > { %p1355_p1 = scmp.ne.s32.totalorder %s1353_s16, %s1354_s17  ;;  %p1360_p12 = scmp.lt.s32.totalorder %s1358_s18, %s1354_s17 }
 0x1d1   : > { %p1356_p3 = pnand %p1355_p1, %p1613_p2  ;;  %p1361_p13 = por %p1360_p12, %p1359_p11 }
 0x1d3   : > { %p1357_p7 = pneg %p1356_p3 }
 0x1d5   : > { %p1362_p0 = pnand %p1361_p13, %p1357_p7 }
 0x218   : > { %v583_v40 = vpop.permute.xlu2 %582 }
 0x230   : > { %v581_v38 = vpop.permute.xlu1 %580 }
 0x231   : > { %v1226_v39 = vpack.i.bf16 %v581_v38, %v443_v35 }
 0x232   : > { %v452_v50 = vpop.permute.xlu0 %451 }
 0x233   : > { %1222 = vrot.lane.b32.xlu2 %v1226_v39, %s1494_s21  ;;  %1227 = vrot.lane.b32.xlu1 %v1226_v39, %s1918_s22  ;;  %v457_v54 = vrot.slane %v452_v50, 4  ;;  %v461_v61 = vsel %vm458_vm5, %v452_v50, %v460_v55 }
 0x234   : > { %v469_v4 = vperm.slane %v461_v61, %v1658_v53 }
 0x235   : > { %v459_v2 = vsel %vm458_vm5, %v457_v54, %v446_v36 }
 0x236   : > { %v465_v12 = vperm.slane %v459_v2, %v1658_v53  ;;  %v496_v23 = vrot.slane %v469_v4, 4 }
 0x238   : > { %v579_v41 = vpop.permute.xlu1 %578  ;;  %v484_v31 = vrot.slane %v465_v12, 4 }
 0x239   : > { %v1236_v42 = vpack.i.bf16 %v583_v40, %v579_v41 }
 0x23b   : > { %1232 = vrot.lane.b32.xlu2 %v1236_v42, %s1494_s21  ;;  %1237 = vrot.lane.b32.xlu1 %v1236_v42, %s1918_s22 }
 0x240   : > { %v449_v3 = vpop.permute.xlu1 %448 }
 0x241   : > { %v472_v13 = vrot.slane %v449_v3, 4 }
 0x243   : > { %454 = vrot.lane.b32.xlu2 %v446_v36, %s1491_s14  ;;  %s1759_s14 = scalar_lea.sflag [#allocation10], %s849_s1 }
 0x28d   : > { %v1223_v43 = vpop.permute.xlu2 %1222 }
 0x28e   : > { %v1225_v44 = vunpack.i.h.bf16 %v1223_v43  ;;  %v1224_v45 = vunpack.i.l.bf16 %v1223_v43 }
 0x290   : > { %v596_v46 = vrot.slane %v1225_v44, 4  ;;  %v598_v47 = vrot.slane %v1224_v45, 4 }
 0x292   : > { %v597_v51 = vsel %vm458_vm5, %v596_v46, %v1224_v45  ;;  %v599_v52 = vsel %vm458_vm5, %v1225_v44, %v598_v47 }
 0x293   : > { %v603_v62 = vperm.slane %v597_v51, %v1658_v53  ;;  %v607_v63 = vperm.slane %v599_v52, %v1658_v53 }
 0x295   : > { %v1233_v56 = vpop.permute.xlu2 %1232  ;;  %v622_v8 = vrot.slane %v603_v62, 4  ;;  %v634_v9 = vrot.slane %v607_v63, 4 }
 0x296   : > { %v1235_v59 = vunpack.i.h.bf16 %v1233_v56  ;;  %v1234_v60 = vunpack.i.l.bf16 %v1233_v56 }
 0x298   : > { %v608_v0 = vrot.slane %v1235_v59, 4  ;;  %v610_v1 = vrot.slane %v1234_v60, 4 }
 0x29a   : > { %v609_v6 = vsel %vm458_vm5, %v608_v0, %v1234_v60  ;;  %v611_v7 = vsel %vm458_vm5, %v1235_v59, %v610_v1 }
 0x29b   : > { %v615_v10 = vperm.slane %v609_v6, %v1658_v53  ;;  %v619_v11 = vperm.slane %v611_v7, %v1658_v53 }
 0x29d   : > { %v620_v14 = vrot.slane %v615_v10, 4  ;;  %v623_v15 = vsel %vm458_vm5, %v615_v10, %v622_v8  ;;  %v632_v16 = vrot.slane %v619_v11, 4  ;;  %v635_v17 = vsel %vm458_vm5, %v619_v11, %v634_v9  ;;  %v455_v18 = vpop.permute.xlu2 %454 }
 0x29e   : > { %v631_v19 = vperm.slane %v623_v15, %v1665_v5  ;;  %v643_v20 = vperm.slane %v635_v17, %v1665_v5  ;;  %v470_v21 = vrot.slane %v455_v18, 4  ;;  %v473_v22 = vsel %vm458_vm5, %v455_v18, %v472_v13 }
 0x29f   : > { %v621_v24 = vsel %vm458_vm5, %v620_v14, %v603_v62  ;;  %v633_v25 = vsel %vm458_vm5, %v632_v16, %v607_v63  ;;  %v481_v26 = vperm.slane %v473_v22, %v1658_v53 }
 0x2a0   : > { %v627_v27 = vperm.slane %v621_v24, %v1665_v5  ;;  %v639_v28 = vperm.slane %v633_v25, %v1665_v5  ;;  %v646_v29 = vrot.slane %v631_v19, 4  ;;  %v650_v30 = vrot.slane %v643_v20, 4 }
 0x2a1   : > { %v471_v32 = vsel %vm458_vm5, %v470_v21, %v449_v3  ;;  %v494_v33 = vrot.slane %v481_v26, 4  ;;  %v497_v34 = vsel %vm458_vm5, %v481_v26, %v496_v23 }
 0x2a2   : > { %v644_v35 = vrot.slane %v627_v27, 4  ;;  %v647_v36 = vsel %vm458_vm5, 0.0, %v646_v29  ;;  %v648_v37 = vrot.slane %v639_v28, 4  ;;  %v651_v38 = vsel %vm458_vm5, 0.0, %v650_v30 }
 0x2a3   : > { %v652_v39 = vsel %vm458_vm5, %v646_v29, %v627_v27  ;;  %v657_v40 = vrot.slane %v647_v36, 4  ;;  %v663_v41 = vsel %vm458_vm5, %v650_v30, %v639_v28  ;;  %v668_v42 = vrot.slane %v651_v38, 4 }
 0x2a4   : > { %v645_v43 = vsel %vm458_vm5, 0.0, %v644_v35  ;;  %v649_v44 = vsel %vm458_vm5, 0.0, %v648_v37  ;;  %v656_v45 = vperm.slane %v652_v39, %v1658_v53  ;;  %v667_v46 = vperm.slane %v663_v41, %v1658_v53 }
 0x2a5   : > { %v658_v47 = vsel %vm458_vm5, %v657_v40, %v645_v43  ;;  %v669_v48 = vsel %vm458_vm5, %v668_v42, %v649_v44  ;;  %v477_v49 = vperm.slane %v471_v32, %v1658_v53  ;;  %v495_v50 = vsel %vm458_vm5, %v494_v33, %v469_v4  ;;  %v1696_v51 = vpop.permute.xlu1 %1227 }
 0x2a6   : > { %v662_v52 = vperm.slane %v658_v47, %v1658_v53  ;;  %v673_v54 = vperm.slane %v669_v48, %v1658_v53  ;;  %v676_v55 = vrot.slane %v656_v45, 4  ;;  %v688_v56 = vrot.slane %v667_v46, 4 }
 0x2a7   : > { %v482_v57 = vrot.slane %v477_v49, 4  ;;  %v485_v58 = vsel %vm458_vm5, %v477_v49, %v484_v31  ;;  %v501_v59 = vperm.slane %v495_v50, %v1665_v5  ;;  %v505_v60 = vperm.slane %v497_v34, %v1665_v5 }
 0x2a8   : > { %v674_v61 = vrot.slane %v662_v52, 4  ;;  %v677_v62 = vsel %vm458_vm5, %v662_v52, %v676_v55  ;;  %v686_v63 = vrot.slane %v673_v54, 4  ;;  %v689_v0 = vsel %vm458_vm5, %v673_v54, %v688_v56 }
 0x2a9   : > { %v685_v1 = vperm.slane %v677_v62, %v1665_v5  ;;  %v697_v2 = vperm.slane %v689_v0, %v1665_v5  ;;  %v483_v3 = vsel %vm458_vm5, %v482_v57, %v465_v12  ;;  %v493_v4 = vperm.slane %v485_v58, %v1665_v5 }
 0x2aa   : > { %v675_v6 = vsel %vm458_vm5, %v674_v61, %v656_v45  ;;  %v687_v7 = vsel %vm458_vm5, %v686_v63, %v667_v46  ;;  %v489_v8 = vperm.slane %v483_v3, %v1665_v5  ;;  %v510_v9 = vrot.slane %v501_v59, 4 }
 0x2ab   : > { %v681_v10 = vperm.slane %v675_v6, %v1665_v5  ;;  %v693_v11 = vperm.slane %v687_v7, %v1665_v5  ;;  %v702_v13 = vrot.slane %v697_v2, 4  ;;  %v704_v14 = vrot.slane %v685_v1, 4 }
 0x2ac   : > { %v506_v12 = vrot.slane %v489_v8, 4  ;;  %v508_v15 = vrot.slane %v493_v4, 4  ;;  %v511_v16 = vsel %vm458_vm5, 0.0, %v510_v9  ;;  %v512_v17 = vrot.slane %v505_v60, 4 }
 0x2ad   : > { %v698_v18 = vrot.slane %v693_v11, 4  ;;  %v700_v19 = vrot.slane %v681_v10, 4  ;;  %v703_v20 = vsel %vm458_vm5, %v702_v13, %v685_v1  ;;  %v705_v21 = vsel %vm458_vm5, %v697_v2, %v704_v14  ;;  %v1737_v30 = vpop.permute.xlu1 %1237 }
 0x2ae   : > { %v708_v22 = vpack.c.bf16 %v703_v20, %v703_v20  ;;  %v709_v23 = vpack.c.bf16 %v705_v21, %v705_v21  ;;  %v507_v24 = vsel %vm458_vm5, 0.0, %v506_v12  ;;  %v509_v25 = vsel %vm458_vm5, 0.0, %v508_v15 }
 0x2af   : > { %v699_v26 = vsel %vm458_vm5, %v698_v18, %v681_v10  ;;  %v701_v27 = vsel %vm458_vm5, %v693_v11, %v700_v19  ;;  %v513_v28 = vsel %vm458_vm5, 0.0, %v512_v17  ;;  %v514_v29 = vsel %vm458_vm5, %v508_v15, %v489_v8 }
 0x2b0   : > { %v706_v31 = vpack.c.bf16 %v699_v26, %v699_v26  ;;  %v707_v32 = vpack.c.bf16 %v701_v27, %v701_v27  ;;  %v518_v33 = vperm.slane %v514_v29, %v1658_v53  ;;  %v519_v34 = vrot.slane %v509_v25, 4  ;;  %712 = vst.msk [vmem:[%s358_s3 + $0x8] sm:$0xf] %vm572_vm6, %v708_v22 }
 0x2b1   : > { %v525_v35 = vsel %vm458_vm5, %v512_v17, %v501_v59  ;;  %v530_v36 = vrot.slane %v513_v28, 4  ;;  %v1230_v37 = vunpack.i.h.bf16 %v1696_v51  ;;  %v1229_v38 = vunpack.i.l.bf16 %v1696_v51  ;;  %713 = vst.msk [vmem:[%s358_s3 + $0xc] sm:$0xf] %vm572_vm6, %v709_v23 }
 0x2b2   : > { %v520_v39 = vsel %vm458_vm5, %v519_v34, %v507_v24  ;;  %v529_v40 = vperm.slane %v525_v35, %v1658_v53  ;;  %v538_v41 = vrot.slane %v518_v33, 4  ;;  %v1240_v42 = vunpack.i.h.bf16 %v1737_v30  ;;  %710 = vst.msk [vmem:[%s358_s3] sm:$0xf] %vm572_vm6, %v706_v31 }
 0x2b3   : > { %v524_v43 = vperm.slane %v520_v39, %v1658_v53  ;;  %v531_v44 = vsel %vm458_vm5, %v530_v36, %v511_v16  ;;  %v726_v45 = vrot.slane %v1230_v37, 4  ;;  %v728_v46 = vrot.slane %v1229_v38, 4  ;;  %711 = vst.msk [vmem:[%s358_s3 + $0x4] sm:$0xf] %vm572_vm6, %v707_v32 }
 0x2b4   : > { %v535_v47 = vperm.slane %v531_v44, %v1658_v53  ;;  %v550_v48 = vrot.slane %v529_v40, 4  ;;  %v738_v49 = vrot.slane %v1240_v42, 4  ;;  %v1239_v50 = vunpack.i.l.bf16 %v1737_v30 }
 0x2b5   : > { %1365 = shalt.err (!%p1362_p0)
}
 0x2b6   : > { %s1498_s30 = smov 4   ;;  %v536_v51 = vrot.slane %v524_v43, 4  ;;  %v539_v52 = vsel %vm458_vm5, %v524_v43, %v538_v41  ;;  %v727_v54 = vsel %vm458_vm5, %v726_v45, %v1229_v38  ;;  %v729_v55 = vsel %vm458_vm5, %v1230_v37, %v728_v46  ;;  %s351_s16 = scalar_lea.vmem [#allocation8], %s1716_s13 }
 0x2b7   : > { %1128 = dma.vmem_to_hbm [thread:$0]  (%p1613_p2), %s1745_s8, 256, %s889_s9, %s1759_s14, %s1918_s22, %s1918_s22, %s1498_s30   ;;  %v547_v56 = vperm.slane %v539_v52, %v1665_v5  ;;  %v548_v57 = vrot.slane %v535_v47, 4  ;;  %v551_v58 = vsel %vm458_vm5, %v535_v47, %v550_v48  ;;  %v733_v59 = vperm.slane %v727_v54, %v1658_v53 }
 0x2b8   : > { %v537_v60 = vsel %vm458_vm5, %v536_v51, %v518_v33  ;;  %v559_v61 = vperm.slane %v551_v58, %v1665_v5  ;;  %v739_v62 = vsel %vm458_vm5, %v738_v49, %v1239_v50  ;;  %s867_s9 = scalar_lea.hbm %s1914_s5, %s1706_s23  ;;  %v737_v4 = vperm.slane %v729_v55, %v1658_v53  ;;  %s868_s17 = sshll.u32 %s351_s16, 4  ;;  %s869_s17 = int_to_ptr.vmem [resolvable:$true] %s868_s17 }
 0x2b9   : > { %v543_v63 = vperm.slane %v537_v60, %v1665_v5  ;;  %v549_v0 = vsel %vm458_vm5, %v548_v57, %v529_v40  ;;  %v566_v1 = vrot.slane %v547_v56, 4  ;;  %v740_v6 = vrot.slane %v1239_v50, 4  ;;  %s1802_s21 = sshll.u32 %s867_s9, 4  ;;  %s845_s27 = scalar_lea.sflag [#allocation4], %s1633_s12  ;;  %s871_s21 = int_to_ptr.hbm [resolvable:$true] %s1802_s21 }
 0x2ba   : > { %v555_v2 = vperm.slane %v549_v0, %v1665_v5  ;;  %v564_v3 = vrot.slane %v559_v61, 4  ;;  %v752_v9 = vrot.slane %v733_v59, 4  ;;  %v745_v10 = vperm.slane %v739_v62, %v1658_v53  ;;  %s1380_s18 = sshra.s32 %s871_s21, 4  ;;  %s1386_s8 = scalar_lea.hbm %s1914_s5, 32  ;;  %s1381_s18 = int_to_ptr.hbm [resolvable:$true] %s1380_s18 }
 0x2bb   : > { %v562_v7 = vrot.slane %v543_v63, 4  ;;  %v567_v8 = vsel %vm458_vm5, %v559_v61, %v566_v1  ;;  %v741_v12 = vsel %vm458_vm5, %v1240_v42, %v740_v6  ;;  %v764_v21 = vrot.slane %v737_v4, 4  ;;  %s1382_s20 = scalar_lea.hbm %s1381_s18, 16  ;;  %p1387_p10 = scmp.lt.s32.totalorder %s1381_s18, %s1914_s5 }
 0x2bc   : > { %v560_v11 = vrot.slane %v555_v2, 4  ;;  %v565_v13 = vsel %vm458_vm5, %v564_v3, %v547_v56  ;;  %v571_v14 = vpack.c.bf16 %v567_v8, %v567_v8  ;;  %v749_v17 = vperm.slane %v741_v12, %v1658_v53  ;;  %p1383_p4 = scmp.ne.s32.totalorder %s1381_s18, %s1382_s20  ;;  %p1388_p1 = scmp.lt.s32.totalorder %s1386_s8, %s1382_s20 }
 0x2bd   : > { %v563_v15 = vsel %vm458_vm5, %v555_v2, %v562_v7  ;;  %v570_v16 = vpack.c.bf16 %v565_v13, %v565_v13  ;;  %v750_v18 = vrot.slane %v745_v10, 4  ;;  %v753_v22 = vsel %vm458_vm5, %v745_v10, %v752_v9 }
 0x2be   : > { %v561_v19 = vsel %vm458_vm5, %v560_v11, %v543_v63  ;;  %v569_v20 = vpack.c.bf16 %v563_v15, %v563_v15  ;;  %576 = vst.msk [vmem:[%s351_s16 + $0xc] sm:$0xf] %vm572_vm6, %v571_v14  ;;  %v761_v25 = vperm.slane %v753_v22, %v1665_v5  ;;  %v762_v26 = vrot.slane %v749_v17, 4  ;;  %p1384_p6 = pnand %p1383_p4, %p1613_p2  ;;  %p1389_p3 = por %p1388_p1, %p1387_p10 }
 0x2bf   : > { %v568_v23 = vpack.c.bf16 %v561_v19, %v561_v19  ;;  %v751_v24 = vsel %vm458_vm5, %v750_v18, %v733_v59  ;;  %575 = vst.msk [vmem:[%s351_s16 + $0x8] sm:$0xf] %vm572_vm6, %v570_v16  ;;  %v765_v28 = vsel %vm458_vm5, %v749_v17, %v764_v21 }
 0x2c0   : > { %v757_v27 = vperm.slane %v751_v24, %v1665_v5  ;;  %574 = vst.msk [vmem:[%s351_s16 + $0x4] sm:$0xf] %vm572_vm6, %v569_v20  ;;  %v763_v29 = vsel %vm458_vm5, %v762_v26, %v737_v4  ;;  %v773_v30 = vperm.slane %v765_v28, %v1665_v5  ;;  %v776_v31 = vrot.slane %v761_v25, 4  ;;  %p1385_p9 = pneg %p1384_p6 }
 0x2c1   : > { %573 = vst.msk [vmem:[%s351_s16] sm:$0xf] %vm572_vm6, %v568_v23  ;;  %v769_v32 = vperm.slane %v763_v29, %v1665_v5 }
 0x2c2   : > { %v774_v33 = vrot.slane %v757_v27, 4  ;;  %p1390_p7 = pnand %p1389_p3, %p1385_p9 }
 0x2c4   : > { %1393 = shalt.err (!%p1390_p7)
}
 0x2c5   : > { %s1928_s12 = smov 64   ;;  %v777_v34 = vsel %vm458_vm5, 0.0, %v776_v31  ;;  %v780_v35 = vrot.slane %v773_v30, 4  ;;  %v782_v36 = vsel %vm458_vm5, %v776_v31, %v757_v27  ;;  %v775_v37 = vsel %vm458_vm5, 0.0, %v774_v33  ;;  %s1414_s1 = scalar_lea.hbm %s1916_s7, 32 }
 0x2c6   : > { %1127 = dma.vmem_to_hbm [thread:$0]  (%p1613_p2), %s869_s17, 256, %s871_s21, %s845_s27, %s1928_s12, %s1928_s12, %s1498_s30   ;;  %v778_v38 = vrot.slane %v769_v32, 4  ;;  %v786_v39 = vperm.slane %v782_v36, %v1658_v53  ;;  %v787_v40 = vrot.slane %v777_v34, 4 }
 0x2c7   : > { %v781_v41 = vsel %vm458_vm5, 0.0, %v780_v35  ;;  %v793_v42 = vsel %vm458_vm5, %v780_v35, %v769_v32  ;;  %s903_s17 = scalar_lea.hbm %s1916_s7, %s1706_s23  ;;  %s365_s27 = scalar_lea.vmem [#allocation11], %s1716_s13 }
 0x2c8   : > { %v779_v43 = vsel %vm458_vm5, 0.0, %v778_v38  ;;  %v788_v44 = vsel %vm458_vm5, %v787_v40, %v775_v37  ;;  %v797_v45 = vperm.slane %v793_v42, %v1658_v53  ;;  %v798_v46 = vrot.slane %v781_v41, 4  ;;  %s1861_s21 = sshll.u32 %s903_s17, 4  ;;  %s904_s18 = sshll.u32 %s365_s27, 4  ;;  %s905_s18 = int_to_ptr.vmem [resolvable:$true] %s904_s18  ;;  %s907_s21 = int_to_ptr.hbm [resolvable:$true] %s1861_s21 }
 0x2c9   : > { %v792_v47 = vperm.slane %v788_v44, %v1658_v53  ;;  %v806_v48 = vrot.slane %v786_v39, 4  ;;  %s1408_s23 = sshra.s32 %s907_s21, 4  ;;  %s1409_s23 = int_to_ptr.hbm [resolvable:$true] %s1408_s23 }
 0x2ca   : > { %v799_v49 = vsel %vm458_vm5, %v798_v46, %v779_v43  ;;  %v818_v50 = vrot.slane %v797_v45, 4  ;;  %s1410_s13 = scalar_lea.hbm %s1409_s23, 16  ;;  %p1415_p0 = scmp.lt.s32.totalorder %s1409_s23, %s1916_s7 }
 0x2cb   : > { %v803_v51 = vperm.slane %v799_v49, %v1658_v53  ;;  %v804_v52 = vrot.slane %v792_v47, 4  ;;  %v807_v54 = vsel %vm458_vm5, %v792_v47, %v806_v48  ;;  %p1411_p11 = scmp.ne.s32.totalorder %s1409_s23, %s1410_s13  ;;  %p1416_p4 = scmp.lt.s32.totalorder %s1414_s1, %s1410_s13 }
 0x2cc   : > { %v815_v55 = vperm.slane %v807_v54, %v1665_v5 }
 0x2cd   : > { %v805_v56 = vsel %vm458_vm5, %v804_v52, %v786_v39  ;;  %v816_v57 = vrot.slane %v803_v51, 4  ;;  %v819_v58 = vsel %vm458_vm5, %v803_v51, %v818_v50  ;;  %p1412_p12 = pnand %p1411_p11, %p1613_p2  ;;  %p1417_p6 = por %p1416_p4, %p1415_p0 }
 0x2ce   : > { %v811_v59 = vperm.slane %v805_v56, %v1665_v5  ;;  %v827_v60 = vperm.slane %v819_v58, %v1665_v5  ;;  %v834_v61 = vrot.slane %v815_v55, 4 }
 0x2cf   : > { %v817_v62 = vsel %vm458_vm5, %v816_v57, %v797_v45  ;;  %p1413_p13 = pneg %p1412_p12 }
 0x2d0   : > { %v823_v53 = vperm.slane %v817_v62, %v1665_v5  ;;  %v830_v63 = vrot.slane %v811_v59, 4  ;;  %v832_v0 = vrot.slane %v827_v60, 4  ;;  %v835_v1 = vsel %vm458_vm5, %v827_v60, %v834_v61 }
 0x2d1   : > { %v839_v2 = vpack.c.bf16 %v835_v1, %v835_v1  ;;  %p1418_p9 = pnand %p1417_p6, %p1413_p13 }
 0x2d2   : > { %v828_v3 = vrot.slane %v823_v53, 4  ;;  %v831_v4 = vsel %vm458_vm5, %v823_v53, %v830_v63  ;;  %v833_v6 = vsel %vm458_vm5, %v832_v0, %v815_v55 }
 0x2d3   : > { %v837_v7 = vpack.c.bf16 %v831_v4, %v831_v4  ;;  %v838_v8 = vpack.c.bf16 %v833_v6, %v833_v6  ;;  %843 = vst.msk [vmem:[%s365_s27 + $0xc] sm:$0xf] %vm572_vm6, %v839_v2 }
 0x2d4   : > { %v829_v5 = vsel %vm458_vm5, %v828_v3, %v811_v59 }
 0x2d5   : > { %v836_v9 = vpack.c.bf16 %v829_v5, %v829_v5  ;;  %841 = vst.msk [vmem:[%s365_s27 + $0x4] sm:$0xf] %vm572_vm6, %v837_v7 }
 0x2d6   : > { %842 = vst.msk [vmem:[%s365_s27 + $0x8] sm:$0xf] %vm572_vm6, %v838_v8 }
 0x2d7   : > { %840 = vst.msk [vmem:[%s365_s27] sm:$0xf] %vm572_vm6, %v836_v9 }
 0x2d8   : > { %1421 = shalt.err (!%p1418_p9)
}
 0x2d9   : > { %1129 = dma.vmem_to_hbm [thread:$0]  (%p1613_p2), %s905_s18, 256, %s907_s21, %s1759_s14, %s1928_s12, %s1928_s12, %s1498_s30  }
 0x2da PF: > { %s921_s22 = sand.u32 1, %s1464_s24   ;;  %p1145_p10 = pnand %p1082_p8, %p1585_p5 }
 0x2db   : > { %s922_s16 = scalar_lea.sflag [#allocation4], %s921_s22 }
 0x2dc   : > { %p1146_p1 = pneg %p1145_p10 }
 0x2de   : > { %1455 = dma.done.wait (%p1146_p1), %s922_s16, 256  }
 0x2df   : > { %1457 = vsyncadd (%p1146_p1), %s922_s16, 4294967040  ;;  %s1929_s17 = sadd.s32 4294967294, %s1484_s29  }
 0x2e0   : > { %s931_s15 = sand.u32 1, %s1929_s17  }
 0x2e1   : > { %s932_s27 = scalar_lea.sflag [#allocation10], %s931_s15 }
 0x2e2   : > { %1459 = dma.done.wait (%p1146_p1), %s932_s27, 512  }
 0x2e3   : > { %1461 = vsyncadd (%p1146_p1), %s932_s27, 4294966784  ;;  %s28_s29 = sadd.s32 1, %s1484_s29   ;;  %s1930_s24 = smov %s1468_s25 }
 0x2e4   : > { %p25_p2 = scmp.ge.s32.totalorder %s28_s29, 4   ;;  %s1931_s25 = smov %s1472_s26 }
 0x2e5   : > { %s1932_s26 = smov %s1623_s19  ;;  %s1933_s27 = smov %s1480_s28 }
 0x2e6   : > { %s1934_s28 = smov %s1936_s11  ;;  %27 = sbr.rel (!%p25_p2) target bundleno = 12 (0xc), region = 125 }
 0x2eb   :  { %948 = vsyncpa [#allocation3], 1 }
 0x2ec   :  { %950 = vsyncpa [#allocation3 + $0x1], 1 }
 0x2ed   :  { %951 = vsyncpa [#allocation6], 1 }
 0x2ee   :  { %952 = vsyncpa [#allocation4], 1 }
 0x2ef   :  { %954 = vsyncpa [#allocation4 + $0x1], 1 }
 0x2f0   :  { %955 = vsyncpa [#allocation10], 1 }
 0x2f1   :  { %957 = vsyncpa [#allocation10 + $0x1], 1 }

// kernel: tpu_custom_call.1
= control target key start
LH: loop header
LB: loop body
LE: loop exit
PB: predicated region body
PF: predicated region fallthrough
CT: control target
= control target key end

     0   :  { %s1909_s0 = inlined_call_operand.hbm [shape: bf16[2,8,32], index: 0, kind: input, shape index: {}]   ;;  %s1910_s1 = inlined_call_operand.hbm [shape: f32[1,32], index: 1, kind: input, shape index: {}]   ;;  %s1911_s2 = inlined_call_operand.vmem [shape: f32[1,32], index: 2, kind: input, shape index: {}]   ;;  %s1912_s3 = inlined_call_operand.hbm [shape: bf16[32,96], index: 3, kind: input, shape index: {}]   ;;  %s1913_s4 = inlined_call_operand.vmem [shape: f32[1,96], index: 4, kind: input, shape index: {}]   ;;  %s1914_s5 = inlined_call_operand.hbm [shape: bf16[2,4,8,8], index: 5, kind: output, shape index: {0}]   ;;  %s1915_s6 = inlined_call_operand.hbm [shape: bf16[2,4,8,8], index: 6, kind: output, shape index: {1}]   ;;  %s1916_s7 = inlined_call_operand.hbm [shape: bf16[2,4,8,8], index: 7, kind: output, shape index: {2}]  }
   0x1   :  { %1920 = sst [smem:[#allocation16_spill]] %s1910_s1 }
   0x2   :  { %1921 = sst [smem:[#allocation17_spill]] %s1912_s3 }
   0x3   :  { %13 = vsyncpa [#allocation3], 0 }
   0x4   :  { %15 = vsyncpa [#allocation3 + $0x1], 0 }
   0x5   :  { %16 = vsyncpa [#allocation6], 0 }
   0x6   :  { %17 = vsyncpa [#allocation4], 0 }
   0x7   :  { %19 = vsyncpa [#allocation4 + $0x1], 0 }
   0x8   :  { %20 = vsyncpa [#allocation10], 0 }
   0x9   :  { %22 = vsyncpa [#allocation10 + $0x1], 0  ;;  %s1539_s24 = smov 0   ;;  %s1541_s25 = smov 0  }
   0xa   :  { %s1543_s26 = smov 0   ;;  %s1545_s27 = smov 0  }
   0xb   :  { %s1547_s28 = smov 0   ;;  %s1549_s29 = smov 0  }
   0xc LB: > { %s1570_s30 = sadd.s32 4294967295, %s1484_s29   ;;  %s1917_s8 = sadd.s32 4294967294, %s1484_s29   ;;  %s1484_s29 = sphi %s1549_s29, %s28_s29   ;;  %s1480_s28 = sphi %s1547_s28, %s1934_s28   ;;  %s1476_s27 = sphi %s1545_s27, %s1933_s27   ;;  %s1472_s26 = sphi %s1543_s26, %s1932_s26   ;;  %s1468_s25 = sphi %s1541_s25, %s1931_s25   ;;  %s1464_s24 = sphi %s1539_s24, %s1930_s24  }
   0xd   : > { %p62_p0 = scmp.ne.s32.totalorder %s1468_s25, %s1464_s24  ;;  %p63_p1 = scmp.eq.s32.totalorder %s1570_s30, 0 }
   0xe   : > { %p178_p2 = scmp.eq.s32.totalorder %s1917_s8, 1  ;;  %p1079_p4 = scmp.ge.s32.totalorder %s1484_s29, 1 }
   0xf   : > { %p1580_p3 = por %p63_p1, %p62_p0  ;;  %p241_p6 = scmp.lt.s32.totalorder %s1484_s29, 3 }
  0x10   : > { %p1585_p5 = por %p178_p2, %p62_p0  ;;  %s1924_s1 = sld [smem:[#allocation16_spill]] }
  0x11   : > { %p1593_p7 = pnand %p1079_p4, %p241_p6  ;;  %p1082_p8 = scmp.ge.s32.totalorder %s1484_s29, 2 }
  0x12   : > { %s1486_s15 = smov [#allocation5]   ;;  %s1926_s3 = sld [smem:[#allocation17_spill]] }
  0x13   : > { %p1133_p9 = pneg %p1593_p7  ;;  %s255_s16 = sshll.u32 %s1486_s15, 4  ;;  %s256_s16 = int_to_ptr.vmem [resolvable:$true] %s255_s16 }
  0x14   : > { %s1487_s20 = smov [#allocation7]   ;;  %s1488_s22 = smov 64  }
  0x15   : > { %p1134_p10 = pnand %p1133_p9, %p63_p1  ;;  %s269_s21 = sshll.u32 %s1487_s20, 4  ;;  %s270_s21 = int_to_ptr.vmem [resolvable:$true] %s269_s21 }
  0x16   : > { %s253_s13 = sshll.u32 %s1924_s1, 4  ;;  %s1489_s23 = smov 4   ;;  %s254_s13 = int_to_ptr.hbm [resolvable:$true] %s253_s13 }
  0x17   : > { %1136 = dma.hbm_to_vmem [thread:$0]  (!%p1134_p10), %s254_s13, 16, %s256_s16, [#allocation6]  }
  0x18   : > { %s267_s19 = sshll.u32 %s1926_s3, 4  ;;  %p172_p11 = scmp.eq.s32.totalorder %s1570_s30, 1  ;;  %s268_s19 = int_to_ptr.hbm [resolvable:$true] %s267_s19 }
  0x19   : > { %1139 = dma.hbm_to_vmem [thread:$0]  (!%p1134_p10), %s268_s19, 256, %s270_s21, [#allocation6], %s1488_s22, %s1488_s22, %s1489_s23  }
  0x1a   : > { %s40_s11 = sadd.s32 1, %s1480_s28  ;;  %s49_s12 = sadd.s32 1, %s1472_s26 }
  0x1b   : > { %p42_p12 = scmp.ge.s32.totalorder %s40_s11, 2  ;;  %p56_p13 = scmp.ne.s32.totalorder %s1472_s26, %s1468_s25 }
  0x1c   : > { %p57_p0 = scmp.eq.s32.totalorder %s1484_s29, 0  ;;  %p1156_p4 = scmp.lt.s32.totalorder %s1484_s29, 2 }
  0x1d   : > { %s1936_s11 = smov (%p42_p12, %s40_s11), 0  ;;  %p1613_p2 = por %p172_p11, %p56_p13 }
  0x1e   : > { %s44_s13 = ssub.s32 %s1480_s28, %s1936_s11  ;;  %s286_s16 = sand.u32 1, %s1472_s26  }
  0x1f   : > { %p47_p6 = scmp.eq.s32.totalorder %s44_s13, 0  ;;  %p58_p9 = por %p57_p0, %p56_p13 }
  0x20   : > { %s1083_s17 = sshll.u32 %s286_s16, 2  ;;  %s1084_s18 = sshll.u32 %s1480_s28, 2 }
  0x21   : > { %s1623_s19 = scalar_select %p47_p6, %s1472_s26, %s49_s12  }
  0x22   : > { %s295_s22 = scalar_lea.hbm %s1909_s0, %s1084_s18  ;;  %s290_s8 = scalar_lea.vmem [#allocation2], %s1083_s17 }
  0x23   : > { %s297_s23 = sshll.u32 %s295_s22, 4  ;;  %s299_s1 = sshll.u32 %s290_s8, 4  ;;  %s298_s23 = int_to_ptr.hbm [resolvable:$true] %s297_s23  ;;  %s300_s1 = int_to_ptr.vmem [resolvable:$true] %s299_s1 }
  0x24   : > { %p1141_p10 = pnand %p1156_p4, %p58_p9  ;;  %s287_s3 = scalar_lea.sflag [#allocation3], %s286_s16 }
  0x25   : > { %308 = sbr.rel (%p1593_p7) target bundleno = 730 (0x2da), region = 40  ;;  %s1633_s12 = sand.u32 (!%p1593_p7), 1, %s1468_s25  }
  0x26   : > { %1143 = dma.hbm_to_vmem [thread:$0]  (!%p1141_p10), %s298_s23, 64, %s300_s1, %s287_s3  }
  0x27   : > { %s1086_s13 = sshll.u32 (!%p1593_p7), %s1633_s12, 2  ;;  %s311_s18 = scalar_lea.sflag (!%p1593_p7), [#allocation3], %s1633_s12 }
  0x28   : > { %s314_s20 = scalar_lea.vmem (!%p1593_p7), [#allocation2], %s1086_s13 }
  0x2a   : > { %1447 = dma.done.wait (%p1580_p3), %s311_s18, 64  }
  0x2b   : > { %1449 = vsyncadd (%p1580_p3), %s311_s18, 4294967232 }
  0x2c   : > { %1451 = dma.done.wait (%p63_p1), [#allocation6], 272  }
  0x2d   : > { %1453 = vsyncadd (%p63_p1), [#allocation6], 4294967024  ;;  %vm371_vm0 = vcmask 261120   ;;  %v367_v0 = vld [vmem:[%s314_s20] sm:$0xf]  ;;  %v1490_v3 = vmov 32.0  }
  0x2e   : > { %v368_v1 = vunpack.c.l.bf16 %v367_v0  ;;  %1244 = vrcp.f32 %v1490_v3  ;;  %v1113_v15 = vld [vmem:[#allocation7 + $0x8] sm:$0xff]  ;;  %v1112_v16 = vld [vmem:[#allocation7] sm:$0xff]  ;;  %v1241_v26 = vld [vmem:[#allocation5] ss:$0 sm:$0xff]  ;;  %s1491_s14 = smov 104   ;;  %s1492_s16 = smov 112  }
  0x2f   : > { %439 = vmatpush.bf16.msra.mxu0 %v1113_v15  ;;  %v1242_v29 = vld [vmem:[%s1911_s2] ss:$0 sm:$0xff]  ;;  %s1493_s17 = smov 120   ;;  %s1494_s21 = smov 96   ;;  %v1496_v48 = vmov 1983009808  }
  0x30   : > { %v372_v2 = vsel %vm371_vm0, %v368_v1, 0.0  ;;  %v1243_v33 = vld [vmem:[%s1913_s4] ss:$0 sm:$0xff]  ;;  %s1918_s22 = smov 64   ;;  %v463_v49 = vunpack.c.l.s4 %v1496_v48  ;;  %vm458_vm5 = vcmask 1047556   ;;  %vm572_vm6 = vcmask 60416  }
  0x31   : > { %373 = vadd.xlane.f32.xlu0 %v372_v2  ;;  %v1497_v57 = vmov 1934713408   ;;  %s1706_s23 = sshll.u32 %s1476_s27, 4  ;;  %s1716_s13 = sshll.u32 %s1633_s12, 4 }
  0x32   : > { %v1658_v53 = vunpack.c.0.s8 %v463_v49  ;;  %v487_v58 = vunpack.c.l.s4 %v1497_v57  ;;  %s885_s20 = scalar_lea.hbm %s1915_s6, %s1706_s23  ;;  %s849_s1 = sand.u32 1, %s1570_s30  }
  0x33   : > { %440 = vmatpush.bf16.msra.mxu0 %v1112_v16  ;;  %s358_s3 = scalar_lea.vmem [#allocation9], %s1716_s13  ;;  %s1731_s9 = sshll.u32 %s885_s20, 4  ;;  %s889_s9 = int_to_ptr.hbm [resolvable:$true] %s1731_s9 }
  0x34   : > { %v1245_v4 = vpop.eup %1244  ;;  %s886_s8 = sshll.u32 %s358_s3, 4  ;;  %s1358_s18 = scalar_lea.hbm %s1915_s6, 32  ;;  %s1745_s8 = int_to_ptr.vmem [resolvable:$true] %s886_s8 }
  0x35   : > { %v376_v5 = vmul.f32 32.0, %v1245_v4  ;;  %vm380_vm1 = vweird.f32 %v1245_v4 }
  0x37   : > { %v377_v6 = vsub.f32 1.0, %v376_v5  ;;  %v1665_v5 = vunpack.c.0.s8 %v487_v58 }
  0x39   : > { %v378_v7 = vmul.f32 %v1245_v4, %v377_v6 }
  0x3b   : > { %v379_v8 = vadd.f32 %v1245_v4, %v378_v7 }
  0x3d   : > { %v381_v9 = vsel %vm380_vm1, %v1245_v4, %v379_v8 }
  0xa4   : > { %v374_v10 = vpop.xlane.xlu0 %373 }
  0xa5   : > { %v382_v11 = vmul.f32 %v381_v9, %v374_v10 }
  0xa7   : > { %v383_v12 = vsub.f32 %v368_v1, %v382_v11 }
  0xa9   : > { %v384_v13 = vmul.f32 %v383_v12, %v383_v12 }
  0xab   : > { %v385_v14 = vsel %vm371_vm0, %v384_v13, 0.0 }
  0xac   : > { %386 = vadd.xlane.f32.xlu0 %v385_v14 }
 0x11f   : > { %v387_v17 = vpop.xlane.xlu0 %386 }
 0x120   : > { %v388_v18 = vmul.f32 %v387_v17, %v381_v9 }
 0x122   : > { %v389_v19 = vadd.f32 1e-05, %v388_v18 }
 0x124   : > { %1246 = vrsqrt.f32 %v389_v19  ;;  %vm396_vm3 = vweird.f32 %v389_v19 }
 0x12a   : > { %v1247_v20 = vpop.eup %1246 }
 0x12b   : > { %v391_v21 = vmul.f32 %v1247_v20, %v389_v19  ;;  %vm397_vm2 = vweird.f32 %v1247_v20 }
 0x12c   : > { %vm398_vm4 = vmor %vm396_vm3, %vm397_vm2 }
 0x12d   : > { %v392_v22 = vmul.f32 %v1247_v20, %v391_v21 }
 0x12f   : > { %v393_v23 = vmul.f32 0.5, %v392_v22 }
 0x131   : > { %v394_v24 = vsub.f32 1.5, %v393_v23 }
 0x133   : > { %v395_v25 = vmul.f32 %v1247_v20, %v394_v24 }
 0x135   : > { %v399_v27 = vsel %vm398_vm4, %v1247_v20, %v395_v25 }
 0x136   : > { %v400_v28 = vmul.f32 %v399_v27, %v383_v12 }
 0x138   : > { %v404_v30 = vmul.f32 %v1241_v26, %v400_v28 }
 0x13a   : > { %v408_v31 = vadd.f32 %v1242_v29, %v404_v30 }
 0x13c   : > { %v409_v32 = vpack.c.bf16 %v408_v31, %v408_v31 }
 0x13e   : > { %1100 = vmatmul.msk.bf16.vlgmr.msra.gmra.mxu0 %vm371_vm0, %v409_v32 }
 0x1bb   : > { %v442_v34 = vpop.f32.mrf.mxu0 }
 0x1bc   : > { %v443_v35 = vadd.f32 %v1243_v33, %v442_v34 }
 0x1be   : > { %582 = vrot.lane.b32.xlu2 %v443_v35, %s1491_s14  ;;  %580 = vrot.lane.b32.xlu1 %v443_v35, %s1492_s16  ;;  %v446_v36 = vmul.f32 0.35355338, %v443_v35 }
 0x1c0   : > { %451 = vrot.lane.b32.xlu0 %v446_v36, %s1492_s16  ;;  %v460_v55 = vrot.slane %v446_v36, 4  ;;  %s1352_s16 = sshra.s32 %s889_s9, 4  ;;  %s1353_s16 = int_to_ptr.hbm [resolvable:$true] %s1352_s16 }
 0x1c1   : > { %p1359_p11 = scmp.lt.s32.totalorder %s1353_s16, %s1915_s6 }
 0x1c3   : > { %v444_v37 = vpop.f32.mrf.mxu0 }
 0x1c6   : > { %578 = vrot.lane.b32.xlu1 %v443_v35, %s1493_s17 }
 0x1ce   : > { %448 = vrot.lane.b32.xlu1 %v446_v36, %s1493_s17  ;;  %s1354_s17 = scalar_lea.hbm %s1353_s16, 16 }
 0x1cf   : > { %p1355_p1 = scmp.ne.s32.totalorder %s1353_s16, %s1354_s17  ;;  %p1360_p12 = scmp.lt.s32.totalorder %s1358_s18, %s1354_s17 }
 0x1d1   : > { %p1356_p3 = pnand %p1355_p1, %p1613_p2  ;;  %p1361_p13 = por %p1360_p12, %p1359_p11 }
 0x1d3   : > { %p1357_p7 = pneg %p1356_p3 }
 0x1d5   : > { %p1362_p0 = pnand %p1361_p13, %p1357_p7 }
 0x218   : > { %v583_v40 = vpop.permute.xlu2 %582 }
 0x230   : > { %v581_v38 = vpop.permute.xlu1 %580 }
 0x231   : > { %v1226_v39 = vpack.i.bf16 %v581_v38, %v443_v35 }
 0x232   : > { %v452_v50 = vpop.permute.xlu0 %451 }
 0x233   : > { %1222 = vrot.lane.b32.xlu2 %v1226_v39, %s1494_s21  ;;  %1227 = vrot.lane.b32.xlu1 %v1226_v39, %s1918_s22  ;;  %v457_v54 = vrot.slane %v452_v50, 4  ;;  %v461_v61 = vsel %vm458_vm5, %v452_v50, %v460_v55 }
 0x234   : > { %v469_v4 = vperm.slane %v461_v61, %v1658_v53 }
 0x235   : > { %v459_v2 = vsel %vm458_vm5, %v457_v54, %v446_v36 }
 0x236   : > { %v465_v12 = vperm.slane %v459_v2, %v1658_v53  ;;  %v496_v23 = vrot.slane %v469_v4, 4 }
 0x238   : > { %v579_v41 = vpop.permute.xlu1 %578  ;;  %v484_v31 = vrot.slane %v465_v12, 4 }
 0x239   : > { %v1236_v42 = vpack.i.bf16 %v583_v40, %v579_v41 }
 0x23b   : > { %1232 = vrot.lane.b32.xlu2 %v1236_v42, %s1494_s21  ;;  %1237 = vrot.lane.b32.xlu1 %v1236_v42, %s1918_s22 }
 0x240   : > { %v449_v3 = vpop.permute.xlu1 %448 }
 0x241   : > { %v472_v13 = vrot.slane %v449_v3, 4 }
 0x243   : > { %454 = vrot.lane.b32.xlu2 %v446_v36, %s1491_s14  ;;  %s1759_s14 = scalar_lea.sflag [#allocation10], %s849_s1 }
 0x28d   : > { %v1223_v43 = vpop.permute.xlu2 %1222 }
 0x28e   : > { %v1225_v44 = vunpack.i.h.bf16 %v1223_v43  ;;  %v1224_v45 = vunpack.i.l.bf16 %v1223_v43 }
 0x290   : > { %v596_v46 = vrot.slane %v1225_v44, 4  ;;  %v598_v47 = vrot.slane %v1224_v45, 4 }
 0x292   : > { %v597_v51 = vsel %vm458_vm5, %v596_v46, %v1224_v45  ;;  %v599_v52 = vsel %vm458_vm5, %v1225_v44, %v598_v47 }
 0x293   : > { %v603_v62 = vperm.slane %v597_v51, %v1658_v53  ;;  %v607_v63 = vperm.slane %v599_v52, %v1658_v53 }
 0x295   : > { %v1233_v56 = vpop.permute.xlu2 %1232  ;;  %v622_v8 = vrot.slane %v603_v62, 4  ;;  %v634_v9 = vrot.slane %v607_v63, 4 }
 0x296   : > { %v1235_v59 = vunpack.i.h.bf16 %v1233_v56  ;;  %v1234_v60 = vunpack.i.l.bf16 %v1233_v56 }
 0x298   : > { %v608_v0 = vrot.slane %v1235_v59, 4  ;;  %v610_v1 = vrot.slane %v1234_v60, 4 }
 0x29a   : > { %v609_v6 = vsel %vm458_vm5, %v608_v0, %v1234_v60  ;;  %v611_v7 = vsel %vm458_vm5, %v1235_v59, %v610_v1 }
 0x29b   : > { %v615_v10 = vperm.slane %v609_v6, %v1658_v53  ;;  %v619_v11 = vperm.slane %v611_v7, %v1658_v53 }
 0x29d   : > { %v620_v14 = vrot.slane %v615_v10, 4  ;;  %v623_v15 = vsel %vm458_vm5, %v615_v10, %v622_v8  ;;  %v632_v16 = vrot.slane %v619_v11, 4  ;;  %v635_v17 = vsel %vm458_vm5, %v619_v11, %v634_v9  ;;  %v455_v18 = vpop.permute.xlu2 %454 }
 0x29e   : > { %v631_v19 = vperm.slane %v623_v15, %v1665_v5  ;;  %v643_v20 = vperm.slane %v635_v17, %v1665_v5  ;;  %v470_v21 = vrot.slane %v455_v18, 4  ;;  %v473_v22 = vsel %vm458_vm5, %v455_v18, %v472_v13 }
 0x29f   : > { %v621_v24 = vsel %vm458_vm5, %v620_v14, %v603_v62  ;;  %v633_v25 = vsel %vm458_vm5, %v632_v16, %v607_v63  ;;  %v481_v26 = vperm.slane %v473_v22, %v1658_v53 }
 0x2a0   : > { %v627_v27 = vperm.slane %v621_v24, %v1665_v5  ;;  %v639_v28 = vperm.slane %v633_v25, %v1665_v5  ;;  %v646_v29 = vrot.slane %v631_v19, 4  ;;  %v650_v30 = vrot.slane %v643_v20, 4 }
 0x2a1   : > { %v471_v32 = vsel %vm458_vm5, %v470_v21, %v449_v3  ;;  %v494_v33 = vrot.slane %v481_v26, 4  ;;  %v497_v34 = vsel %vm458_vm5, %v481_v26, %v496_v23 }
 0x2a2   : > { %v644_v35 = vrot.slane %v627_v27, 4  ;;  %v647_v36 = vsel %vm458_vm5, 0.0, %v646_v29  ;;  %v648_v37 = vrot.slane %v639_v28, 4  ;;  %v651_v38 = vsel %vm458_vm5, 0.0, %v650_v30 }
 0x2a3   : > { %v652_v39 = vsel %vm458_vm5, %v646_v29, %v627_v27  ;;  %v657_v40 = vrot.slane %v647_v36, 4  ;;  %v663_v41 = vsel %vm458_vm5, %v650_v30, %v639_v28  ;;  %v668_v42 = vrot.slane %v651_v38, 4 }
 0x2a4   : > { %v645_v43 = vsel %vm458_vm5, 0.0, %v644_v35  ;;  %v649_v44 = vsel %vm458_vm5, 0.0, %v648_v37  ;;  %v656_v45 = vperm.slane %v652_v39, %v1658_v53  ;;  %v667_v46 = vperm.slane %v663_v41, %v1658_v53 }
 0x2a5   : > { %v658_v47 = vsel %vm458_vm5, %v657_v40, %v645_v43  ;;  %v669_v48 = vsel %vm458_vm5, %v668_v42, %v649_v44  ;;  %v477_v49 = vperm.slane %v471_v32, %v1658_v53  ;;  %v495_v50 = vsel %vm458_vm5, %v494_v33, %v469_v4  ;;  %v1696_v51 = vpop.permute.xlu1 %1227 }
 0x2a6   : > { %v662_v52 = vperm.slane %v658_v47, %v1658_v53  ;;  %v673_v54 = vperm.slane %v669_v48, %v1658_v53  ;;  %v676_v55 = vrot.slane %v656_v45, 4  ;;  %v688_v56 = vrot.slane %v667_v46, 4 }
 0x2a7   : > { %v482_v57 = vrot.slane %v477_v49, 4  ;;  %v485_v58 = vsel %vm458_vm5, %v477_v49, %v484_v31  ;;  %v501_v59 = vperm.slane %v495_v50, %v1665_v5  ;;  %v505_v60 = vperm.slane %v497_v34, %v1665_v5 }
 0x2a8   : > { %v674_v61 = vrot.slane %v662_v52, 4  ;;  %v677_v62 = vsel %vm458_vm5, %v662_v52, %v676_v55  ;;  %v686_v63 = vrot.slane %v673_v54, 4  ;;  %v689_v0 = vsel %vm458_vm5, %v673_v54, %v688_v56 }
 0x2a9   : > { %v685_v1 = vperm.slane %v677_v62, %v1665_v5  ;;  %v697_v2 = vperm.slane %v689_v0, %v1665_v5  ;;  %v483_v3 = vsel %vm458_vm5, %v482_v57, %v465_v12  ;;  %v493_v4 = vperm.slane %v485_v58, %v1665_v5 }
 0x2aa   : > { %v675_v6 = vsel %vm458_vm5, %v674_v61, %v656_v45  ;;  %v687_v7 = vsel %vm458_vm5, %v686_v63, %v667_v46  ;;  %v489_v8 = vperm.slane %v483_v3, %v1665_v5  ;;  %v510_v9 = vrot.slane %v501_v59, 4 }
 0x2ab   : > { %v681_v10 = vperm.slane %v675_v6, %v1665_v5  ;;  %v693_v11 = vperm.slane %v687_v7, %v1665_v5  ;;  %v702_v13 = vrot.slane %v697_v2, 4  ;;  %v704_v14 = vrot.slane %v685_v1, 4 }
 0x2ac   : > { %v506_v12 = vrot.slane %v489_v8, 4  ;;  %v508_v15 = vrot.slane %v493_v4, 4  ;;  %v511_v16 = vsel %vm458_vm5, 0.0, %v510_v9  ;;  %v512_v17 = vrot.slane %v505_v60, 4 }
 0x2ad   : > { %v698_v18 = vrot.slane %v693_v11, 4  ;;  %v700_v19 = vrot.slane %v681_v10, 4  ;;  %v703_v20 = vsel %vm458_vm5, %v702_v13, %v685_v1  ;;  %v705_v21 = vsel %vm458_vm5, %v697_v2, %v704_v14  ;;  %v1737_v30 = vpop.permute.xlu1 %1237 }
 0x2ae   : > { %v708_v22 = vpack.c.bf16 %v703_v20, %v703_v20  ;;  %v709_v23 = vpack.c.bf16 %v705_v21, %v705_v21  ;;  %v507_v24 = vsel %vm458_vm5, 0.0, %v506_v12  ;;  %v509_v25 = vsel %vm458_vm5, 0.0, %v508_v15 }
 0x2af   : > { %v699_v26 = vsel %vm458_vm5, %v698_v18, %v681_v10  ;;  %v701_v27 = vsel %vm458_vm5, %v693_v11, %v700_v19  ;;  %v513_v28 = vsel %vm458_vm5, 0.0, %v512_v17  ;;  %v514_v29 = vsel %vm458_vm5, %v508_v15, %v489_v8 }
 0x2b0   : > { %v706_v31 = vpack.c.bf16 %v699_v26, %v699_v26  ;;  %v707_v32 = vpack.c.bf16 %v701_v27, %v701_v27  ;;  %v518_v33 = vperm.slane %v514_v29, %v1658_v53  ;;  %v519_v34 = vrot.slane %v509_v25, 4  ;;  %712 = vst.msk [vmem:[%s358_s3 + $0x8] sm:$0xf] %vm572_vm6, %v708_v22 }
 0x2b1   : > { %v525_v35 = vsel %vm458_vm5, %v512_v17, %v501_v59  ;;  %v530_v36 = vrot.slane %v513_v28, 4  ;;  %v1230_v37 = vunpack.i.h.bf16 %v1696_v51  ;;  %v1229_v38 = vunpack.i.l.bf16 %v1696_v51  ;;  %713 = vst.msk [vmem:[%s358_s3 + $0xc] sm:$0xf] %vm572_vm6, %v709_v23 }
 0x2b2   : > { %v520_v39 = vsel %vm458_vm5, %v519_v34, %v507_v24  ;;  %v529_v40 = vperm.slane %v525_v35, %v1658_v53  ;;  %v538_v41 = vrot.slane %v518_v33, 4  ;;  %v1240_v42 = vunpack.i.h.bf16 %v1737_v30  ;;  %710 = vst.msk [vmem:[%s358_s3] sm:$0xf] %vm572_vm6, %v706_v31 }
 0x2b3   : > { %v524_v43 = vperm.slane %v520_v39, %v1658_v53  ;;  %v531_v44 = vsel %vm458_vm5, %v530_v36, %v511_v16  ;;  %v726_v45 = vrot.slane %v1230_v37, 4  ;;  %v728_v46 = vrot.slane %v1229_v38, 4  ;;  %711 = vst.msk [vmem:[%s358_s3 + $0x4] sm:$0xf] %vm572_vm6, %v707_v32 }
 0x2b4   : > { %v535_v47 = vperm.slane %v531_v44, %v1658_v53  ;;  %v550_v48 = vrot.slane %v529_v40, 4  ;;  %v738_v49 = vrot.slane %v1240_v42, 4  ;;  %v1239_v50 = vunpack.i.l.bf16 %v1737_v30 }
 0x2b5   : > { %1365 = shalt.err (!%p1362_p0)
}
 0x2b6   : > { %s1498_s30 = smov 4   ;;  %v536_v51 = vrot.slane %v524_v43, 4  ;;  %v539_v52 = vsel %vm458_vm5, %v524_v43, %v538_v41  ;;  %v727_v54 = vsel %vm458_vm5, %v726_v45, %v1229_v38  ;;  %v729_v55 = vsel %vm458_vm5, %v1230_v37, %v728_v46  ;;  %s351_s16 = scalar_lea.vmem [#allocation8], %s1716_s13 }
 0x2b7   : > { %1128 = dma.vmem_to_hbm [thread:$0]  (%p1613_p2), %s1745_s8, 256, %s889_s9, %s1759_s14, %s1918_s22, %s1918_s22, %s1498_s30   ;;  %v547_v56 = vperm.slane %v539_v52, %v1665_v5  ;;  %v548_v57 = vrot.slane %v535_v47, 4  ;;  %v551_v58 = vsel %vm458_vm5, %v535_v47, %v550_v48  ;;  %v733_v59 = vperm.slane %v727_v54, %v1658_v53 }
 0x2b8   : > { %v537_v60 = vsel %vm458_vm5, %v536_v51, %v518_v33  ;;  %v559_v61 = vperm.slane %v551_v58, %v1665_v5  ;;  %v739_v62 = vsel %vm458_vm5, %v738_v49, %v1239_v50  ;;  %s867_s9 = scalar_lea.hbm %s1914_s5, %s1706_s23  ;;  %v737_v4 = vperm.slane %v729_v55, %v1658_v53  ;;  %s868_s17 = sshll.u32 %s351_s16, 4  ;;  %s869_s17 = int_to_ptr.vmem [resolvable:$true] %s868_s17 }
 0x2b9   : > { %v543_v63 = vperm.slane %v537_v60, %v1665_v5  ;;  %v549_v0 = vsel %vm458_vm5, %v548_v57, %v529_v40  ;;  %v566_v1 = vrot.slane %v547_v56, 4  ;;  %v740_v6 = vrot.slane %v1239_v50, 4  ;;  %s1802_s21 = sshll.u32 %s867_s9, 4  ;;  %s845_s27 = scalar_lea.sflag [#allocation4], %s1633_s12  ;;  %s871_s21 = int_to_ptr.hbm [resolvable:$true] %s1802_s21 }
 0x2ba   : > { %v555_v2 = vperm.slane %v549_v0, %v1665_v5  ;;  %v564_v3 = vrot.slane %v559_v61, 4  ;;  %v752_v9 = vrot.slane %v733_v59, 4  ;;  %v745_v10 = vperm.slane %v739_v62, %v1658_v53  ;;  %s1380_s18 = sshra.s32 %s871_s21, 4  ;;  %s1386_s8 = scalar_lea.hbm %s1914_s5, 32  ;;  %s1381_s18 = int_to_ptr.hbm [resolvable:$true] %s1380_s18 }
 0x2bb   : > { %v562_v7 = vrot.slane %v543_v63, 4  ;;  %v567_v8 = vsel %vm458_vm5, %v559_v61, %v566_v1  ;;  %v741_v12 = vsel %vm458_vm5, %v1240_v42, %v740_v6  ;;  %v764_v21 = vrot.slane %v737_v4, 4  ;;  %s1382_s20 = scalar_lea.hbm %s1381_s18, 16  ;;  %p1387_p10 = scmp.lt.s32.totalorder %s1381_s18, %s1914_s5 }
 0x2bc   : > { %v560_v11 = vrot.slane %v555_v2, 4  ;;  %v565_v13 = vsel %vm458_vm5, %v564_v3, %v547_v56  ;;  %v571_v14 = vpack.c.bf16 %v567_v8, %v567_v8  ;;  %v749_v17 = vperm.slane %v741_v12, %v1658_v53  ;;  %p1383_p4 = scmp.ne.s32.totalorder %s1381_s18, %s1382_s20  ;;  %p1388_p1 = scmp.lt.s32.totalorder %s1386_s8, %s1382_s20 }
 0x2bd   : > { %v563_v15 = vsel %vm458_vm5, %v555_v2, %v562_v7  ;;  %v570_v16 = vpack.c.bf16 %v565_v13, %v565_v13  ;;  %v750_v18 = vrot.slane %v745_v10, 4  ;;  %v753_v22 = vsel %vm458_vm5, %v745_v10, %v752_v9 }
 0x2be   : > { %v561_v19 = vsel %vm458_vm5, %v560_v11, %v543_v63  ;;  %v569_v20 = vpack.c.bf16 %v563_v15, %v563_v15  ;;  %576 = vst.msk [vmem:[%s351_s16 + $0xc] sm:$0xf] %vm572_vm6, %v571_v14  ;;  %v761_v25 = vperm.slane %v753_v22, %v1665_v5  ;;  %v762_v26 = vrot.slane %v749_v17, 4  ;;  %p1384_p6 = pnand %p1383_p4, %p1613_p2  ;;  %p1389_p3 = por %p1388_p1, %p1387_p10 }
 0x2bf   : > { %v568_v23 = vpack.c.bf16 %v561_v19, %v561_v19  ;;  %v751_v24 = vsel %vm458_vm5, %v750_v18, %v733_v59  ;;  %575 = vst.msk [vmem:[%s351_s16 + $0x8] sm:$0xf] %vm572_vm6, %v570_v16  ;;  %v765_v28 = vsel %vm458_vm5, %v749_v17, %v764_v21 }
 0x2c0   : > { %v757_v27 = vperm.slane %v751_v24, %v1665_v5  ;;  %574 = vst.msk [vmem:[%s351_s16 + $0x4] sm:$0xf] %vm572_vm6, %v569_v20  ;;  %v763_v29 = vsel %vm458_vm5, %v762_v26, %v737_v4  ;;  %v773_v30 = vperm.slane %v765_v28, %v1665_v5  ;;  %v776_v31 = vrot.slane %v761_v25, 4  ;;  %p1385_p9 = pneg %p1384_p6 }
 0x2c1   : > { %573 = vst.msk [vmem:[%s351_s16] sm:$0xf] %vm572_vm6, %v568_v23  ;;  %v769_v32 = vperm.slane %v763_v29, %v1665_v5 }
 0x2c2   : > { %v774_v33 = vrot.slane %v757_v27, 4  ;;  %p1390_p7 = pnand %p1389_p3, %p1385_p9 }
 0x2c4   : > { %1393 = shalt.err (!%p1390_p7)
}
 0x2c5   : > { %s1928_s12 = smov 64   ;;  %v777_v34 = vsel %vm458_vm5, 0.0, %v776_v31  ;;  %v780_v35 = vrot.slane %v773_v30, 4  ;;  %v782_v36 = vsel %vm458_vm5, %v776_v31, %v757_v27  ;;  %v775_v37 = vsel %vm458_vm5, 0.0, %v774_v33  ;;  %s1414_s1 = scalar_lea.hbm %s1916_s7, 32 }
 0x2c6   : > { %1127 = dma.vmem_to_hbm [thread:$0]  (%p1613_p2), %s869_s17, 256, %s871_s21, %s845_s27, %s1928_s12, %s1928_s12, %s1498_s30   ;;  %v778_v38 = vrot.slane %v769_v32, 4  ;;  %v786_v39 = vperm.slane %v782_v36, %v1658_v53  ;;  %v787_v40 = vrot.slane %v777_v34, 4 }
 0x2c7   : > { %v781_v41 = vsel %vm458_vm5, 0.0, %v780_v35  ;;  %v793_v42 = vsel %vm458_vm5, %v780_v35, %v769_v32  ;;  %s903_s17 = scalar_lea.hbm %s1916_s7, %s1706_s23  ;;  %s365_s27 = scalar_lea.vmem [#allocation11], %s1716_s13 }
 0x2c8   : > { %v779_v43 = vsel %vm458_vm5, 0.0, %v778_v38  ;;  %v788_v44 = vsel %vm458_vm5, %v787_v40, %v775_v37  ;;  %v797_v45 = vperm.slane %v793_v42, %v1658_v53  ;;  %v798_v46 = vrot.slane %v781_v41, 4  ;;  %s1861_s21 = sshll.u32 %s903_s17, 4  ;;  %s904_s18 = sshll.u32 %s365_s27, 4  ;;  %s905_s18 = int_to_ptr.vmem [resolvable:$true] %s904_s18  ;;  %s907_s21 = int_to_ptr.hbm [resolvable:$true] %s1861_s21 }
 0x2c9   : > { %v792_v47 = vperm.slane %v788_v44, %v1658_v53  ;;  %v806_v48 = vrot.slane %v786_v39, 4  ;;  %s1408_s23 = sshra.s32 %s907_s21, 4  ;;  %s1409_s23 = int_to_ptr.hbm [resolvable:$true] %s1408_s23 }
 0x2ca   : > { %v799_v49 = vsel %vm458_vm5, %v798_v46, %v779_v43  ;;  %v818_v50 = vrot.slane %v797_v45, 4  ;;  %s1410_s13 = scalar_lea.hbm %s1409_s23, 16  ;;  %p1415_p0 = scmp.lt.s32.totalorder %s1409_s23, %s1916_s7 }
 0x2cb   : > { %v803_v51 = vperm.slane %v799_v49, %v1658_v53  ;;  %v804_v52 = vrot.slane %v792_v47, 4  ;;  %v807_v54 = vsel %vm458_vm5, %v792_v47, %v806_v48  ;;  %p1411_p11 = scmp.ne.s32.totalorder %s1409_s23, %s1410_s13  ;;  %p1416_p4 = scmp.lt.s32.totalorder %s1414_s1, %s1410_s13 }
 0x2cc   : > { %v815_v55 = vperm.slane %v807_v54, %v1665_v5 }
 0x2cd   : > { %v805_v56 = vsel %vm458_vm5, %v804_v52, %v786_v39  ;;  %v816_v57 = vrot.slane %v803_v51, 4  ;;  %v819_v58 = vsel %vm458_vm5, %v803_v51, %v818_v50  ;;  %p1412_p12 = pnand %p1411_p11, %p1613_p2  ;;  %p1417_p6 = por %p1416_p4, %p1415_p0 }
 0x2ce   : > { %v811_v59 = vperm.slane %v805_v56, %v1665_v5  ;;  %v827_v60 = vperm.slane %v819_v58, %v1665_v5  ;;  %v834_v61 = vrot.slane %v815_v55, 4 }
 0x2cf   : > { %v817_v62 = vsel %vm458_vm5, %v816_v57, %v797_v45  ;;  %p1413_p13 = pneg %p1412_p12 }
 0x2d0   : > { %v823_v53 = vperm.slane %v817_v62, %v1665_v5  ;;  %v830_v63 = vrot.slane %v811_v59, 4  ;;  %v832_v0 = vrot.slane %v827_v60, 4  ;;  %v835_v1 = vsel %vm458_vm5, %v827_v60, %v834_v61 }
 0x2d1   : > { %v839_v2 = vpack.c.bf16 %v835_v1, %v835_v1  ;;  %p1418_p9 = pnand %p1417_p6, %p1413_p13 }
 0x2d2   : > { %v828_v3 = vrot.slane %v823_v53, 4  ;;  %v831_v4 = vsel %vm458_vm5, %v823_v53, %v830_v63  ;;  %v833_v6 = vsel %vm458_vm5, %v832_v0, %v815_v55 }
 0x2d3   : > { %v837_v7 = vpack.c.bf16 %v831_v4, %v831_v4  ;;  %v838_v8 = vpack.c.bf16 %v833_v6, %v833_v6  ;;  %843 = vst.msk [vmem:[%s365_s27 + $0xc] sm:$0xf] %vm572_vm6, %v839_v2 }
 0x2d4   : > { %v829_v5 = vsel %vm458_vm5, %v828_v3, %v811_v59 }
 0x2d5   : > { %v836_v9 = vpack.c.bf16 %v829_v5, %v829_v5  ;;  %841 = vst.msk [vmem:[%s365_s27 + $0x4] sm:$0xf] %vm572_vm6, %v837_v7 }
 0x2d6   : > { %842 = vst.msk [vmem:[%s365_s27 + $0x8] sm:$0xf] %vm572_vm6, %v838_v8 }
 0x2d7   : > { %840 = vst.msk [vmem:[%s365_s27] sm:$0xf] %vm572_vm6, %v836_v9 }
 0x2d8   : > { %1421 = shalt.err (!%p1418_p9)
}
 0x2d9   : > { %1129 = dma.vmem_to_hbm [thread:$0]  (%p1613_p2), %s905_s18, 256, %s907_s21, %s1759_s14, %s1928_s12, %s1928_s12, %s1498_s30  }
 0x2da PF: > { %s921_s22 = sand.u32 1, %s1464_s24   ;;  %p1145_p10 = pnand %p1082_p8, %p1585_p5 }
 0x2db   : > { %s922_s16 = scalar_lea.sflag [#allocation4], %s921_s22 }
 0x2dc   : > { %p1146_p1 = pneg %p1145_p10 }
 0x2de   : > { %1455 = dma.done.wait (%p1146_p1), %s922_s16, 256  }
 0x2df   : > { %1457 = vsyncadd (%p1146_p1), %s922_s16, 4294967040  ;;  %s1929_s17 = sadd.s32 4294967294, %s1484_s29  }
 0x2e0   : > { %s931_s15 = sand.u32 1, %s1929_s17  }
 0x2e1   : > { %s932_s27 = scalar_lea.sflag [#allocation10], %s931_s15 }
 0x2e2   : > { %1459 = dma.done.wait (%p1146_p1), %s932_s27, 512  }
 0x2e3   : > { %1461 = vsyncadd (%p1146_p1), %s932_s27, 4294966784  ;;  %s28_s29 = sadd.s32 1, %s1484_s29   ;;  %s1930_s24 = smov %s1468_s25 }
 0x2e4   : > { %p25_p2 = scmp.ge.s32.totalorder %s28_s29, 4   ;;  %s1931_s25 = smov %s1472_s26 }
 0x2e5   : > { %s1932_s26 = smov %s1623_s19  ;;  %s1933_s27 = smov %s1480_s28 }
 0x2e6   : > { %s1934_s28 = smov %s1936_s11  ;;  %27 = sbr.rel (!%p25_p2) target bundleno = 12 (0xc), region = 125 }
 0x2eb   :  { %948 = vsyncpa [#allocation3], 1 }
 0x2ec   :  { %950 = vsyncpa [#allocation3 + $0x1], 1 }
 0x2ed   :  { %951 = vsyncpa [#allocation6], 1 }
 0x2ee   :  { %952 = vsyncpa [#allocation4], 1 }
 0x2ef   :  { %954 = vsyncpa [#allocation4 + $0x1], 1 }
 0x2f0   :  { %955 = vsyncpa [#allocation10], 1 }
 0x2f1   :  { %957 = vsyncpa [#allocation10 + $0x1], 1 }

</bundles_post_ra>
